<compile_context>
chip_gen: v7x
topology: tpu7x:2x2x1
jax: 0.10.0
libtpu: 0.0.40
codegen_flags: <defaults>
</compile_context>

<pallas_src>
import functools

import jax
import jax.numpy as jnp
from jax.experimental import pallas as pl
from jax.experimental.pallas import tpu as pltpu

LANE = 128  # TPU lane width; feature dims and node count are padded to this.


def _round_up(x, m):
    return (x + m - 1) // m * m


def _vmem_budget_bytes():
    """Per-TensorCore VMEM budget (physical capacity minus compiler headroom)."""
    try:
        cap = pltpu.get_tpu_info().vmem_capacity_bytes
        if not cap:
            raise ValueError("unknown VMEM capacity")
    except Exception:
        cap = 64 << 20  # conservative default = v7x per-TC VMEM
    # ~109 MiB on 128 MiB chips (v5e/v6e), ~54 MiB on 64 MiB chips (v7x).
    return min(int(cap * 0.85), cap - (8 << 20))


# ---------------------------------------------------------------------------
# Fast path: full encoder -> decoder stack fused into one pallas_call, A_hat
# resident in VMEM, running activation in a bf16 VMEM scratch.
# refs: adj (Np,Np) adt | x (Np,P) cdt | w (L,P,P) cdt | b (L,P) f32
#       -> emb (Np,P) f32, rec (Np,P) f32 ; scratch h (Np,P) cdt
# ---------------------------------------------------------------------------
def _gcn_ende_fused_kernel(adj_ref, x_ref, w_ref, b_ref, emb_ref, rec_ref,
                           h_ref, *, num_enc, num_dec, compute_dtype,
                           adj_dtype):
    n_layers = num_enc + num_dec
    adj = adj_ref[...]                       # (Np, Np) adj_dtype, loaded once
    h_ref[...] = x_ref[...]                  # running activation, bf16, VMEM

    for l in range(n_layers):                # static unroll (per-layer consts)
        last_of_backbone = (l == num_enc - 1) or (l == n_layers - 1)

        # Y = A_hat @ (H @ W) + b; MXU operands in compute/adj dtype, f32 acc.
        t = jnp.dot(h_ref[...], w_ref[l], preferred_element_type=jnp.float32)
        y = jnp.dot(adj, t.astype(adj_dtype),
                    preferred_element_type=jnp.float32)
        y = y + b_ref[l:l + 1, :]                       # (1, P) f32 bias row

        if not last_of_backbone:                        # PyG BasicGNN: no act
            y = jnp.maximum(y, 0.0)                     # on a stack's last

        if l == num_enc - 1:
            emb_ref[...] = y                            # encoder output (f32)
        if l == n_layers - 1:
            rec_ref[...] = y                            # decoder output (f32)
        else:
            h_ref[...] = y.astype(compute_dtype)        # single cast on store


# ---------------------------------------------------------------------------
# Streamed fallback (large N): one layer, grid over A_hat row tiles.
# y[tile] = (A_hat[tile,:] @ H) @ W + b  ==  (A_hat @ (H @ W) + b)[tile]
# ---------------------------------------------------------------------------
def _gcn_layer_rowtiled_kernel(adj_ref, h_ref, w_ref, b_ref, y_ref, *,
                               apply_relu, compute_dtype, adj_dtype):
    h = h_ref[...]                                      # (Np, P) resident
    if adj_dtype != compute_dtype:
        h = h.astype(adj_dtype)
    s = jnp.dot(adj_ref[...], h, preferred_element_type=jnp.float32)
    y = jnp.dot(s.astype(compute_dtype), w_ref[...],
                preferred_element_type=jnp.float32)
    y = y + b_ref[...]
    if apply_relu:
        y = jnp.maximum(y, 0.0)
    y_ref[...] = y.astype(y_ref.dtype)


def _gcn_layer_rowtiled(adj_p, h_p, w_p, b_row, *, apply_relu, out_dtype,
                        compute_dtype, adj_dtype, tile_m, vmem_limit):
    n_pad, p = h_p.shape
    n_tiles = n_pad // tile_m
    flops = 2 * (n_pad * n_pad * p + n_pad * p * p)
    bytes_accessed = (adj_p.size * adj_p.dtype.itemsize      # A_hat per layer
                      + h_p.size * h_p.dtype.itemsize
                      + w_p.size * w_p.dtype.itemsize
                      + b_row.size * 4
                      + n_pad * p * jnp.dtype(out_dtype).itemsize)
    kernel = functools.partial(_gcn_layer_rowtiled_kernel,
                               apply_relu=apply_relu,
                               compute_dtype=compute_dtype,
                               adj_dtype=adj_dtype)
    return pl.pallas_call(
        kernel,
        out_shape=jax.ShapeDtypeStruct((n_pad, p), out_dtype),
        grid=(n_tiles,),
        in_specs=[
            # A_hat row tile, streamed (default double-buffered) from HBM.
            pl.BlockSpec((tile_m, n_pad), lambda i: (i, 0)),
            # Full previous activation / W / b: constant block -> resident.
            pl.BlockSpec((n_pad, p), lambda i: (0, 0)),
            pl.BlockSpec((p, p), lambda i: (0, 0)),
            pl.BlockSpec((1, p), lambda i: (0, 0)),
        ],
        out_specs=pl.BlockSpec((tile_m, p), lambda i: (i, 0)),
        compiler_params=pltpu.CompilerParams(
            dimension_semantics=("parallel",),   # v7x: 2 TCs share row tiles
            vmem_limit_bytes=vmem_limit),
        cost_estimate=pl.CostEstimate(flops=flops, transcendentals=0,
                                      bytes_accessed=bytes_accessed),
    )(adj_p, h_p, w_p, b_row)


# ---------------------------------------------------------------------------
# Wrapper: pad / stack params, pick fused vs. streamed path, slice back.
# ---------------------------------------------------------------------------
def gcn_en_de_forward(x, adj, enc_params, dec_params,
                      compute_dtype=jnp.bfloat16, adj_dtype=None,
                      force_tiled=False):
    if adj_dtype is None:
        adj_dtype = compute_dtype  # on v7x, jnp.float8_e4m3fn halves adj bytes
    n, in_dim = x.shape
    hid_dim = enc_params[-1][0].shape[1]
    num_enc, num_dec = len(enc_params), len(dec_params)
    n_layers = num_enc + num_dec
    params = list(enc_params) + list(dec_params)

    # Feature pad target: minimal multiple of the 128 lane width that covers
    # every layer dim (handles in/hid dims > 128).  Note: 128-wide features
    # only half-fill the 256-wide MXU on v6e/v7x; pick hid_dim as a multiple
    # of 128/256 if MXU-bound.
    max_dim = max(in_dim, max(max(w.shape) for w, _ in params))
    p = _round_up(max_dim, LANE)
    n_pad = _round_up(n, LANE)

    def pad2(a, rows, cols):
        return jnp.pad(a, ((0, rows - a.shape[0]), (0, cols - a.shape[1])))

    adj_bytes = jnp.dtype(adj_dtype).itemsize
    cdt_bytes = jnp.dtype(compute_dtype).itemsize
    budget = _vmem_budget_bytes()

    # Resident-adj footprint: adj + x + W stack + b stack + emb/rec + h scratch.
    fused_footprint = (n_pad * n_pad * adj_bytes
                       + n_pad * p * cdt_bytes
                       + n_layers * p * p * cdt_bytes
                       + n_layers * p * 4
                       + 2 * n_pad * p * 4
                       + n_pad * p * cdt_bytes)
    use_fused = (not force_tiled) and fused_footprint + (4 << 20) <= budget

    adj_p = pad2(adj, n_pad, n_pad).astype(adj_dtype)
    x_p = pad2(x, n_pad, p).astype(compute_dtype)

    if use_fused:
        w_all = jnp.stack([pad2(w, p, p) for w, _ in params]
                          ).astype(compute_dtype)
        b_all = jnp.stack([jnp.pad(b, (0, p - b.shape[0])) for _, b in params]
                          ).astype(jnp.float32)

        flops = 2 * n_layers * (n_pad * p * p + n_pad * n_pad * p)
        bytes_accessed = (adj_p.size * adj_bytes + x_p.size * cdt_bytes
                          + w_all.size * cdt_bytes + b_all.size * 4
                          + 2 * n_pad * p * 4)
        kernel = functools.partial(_gcn_ende_fused_kernel, num_enc=num_enc,
                                   num_dec=num_dec,
                                   compute_dtype=compute_dtype,
                                   adj_dtype=adj_dtype)
        emb_p, rec_p = pl.pallas_call(
            kernel,
            out_shape=(jax.ShapeDtypeStruct((n_pad, p), jnp.float32),
                       jax.ShapeDtypeStruct((n_pad, p), jnp.float32)),
            in_specs=[pl.BlockSpec(memory_space=pltpu.MemorySpace.VMEM)] * 4,
            out_specs=(pl.BlockSpec(memory_space=pltpu.MemorySpace.VMEM),
                       pl.BlockSpec(memory_space=pltpu.MemorySpace.VMEM)),
            scratch_shapes=[pltpu.VMEM((n_pad, p), compute_dtype)],
            compiler_params=pltpu.CompilerParams(vmem_limit_bytes=budget),
            cost_estimate=pl.CostEstimate(flops=flops, transcendentals=0,
                                          bytes_accessed=bytes_accessed),
        )(adj_p, x_p, w_all, b_all)
        return rec_p[:n, :in_dim], emb_p[:n, :hid_dim]

    # ----- streamed / row-tiled fallback (A_hat re-read once per layer) -----
    # Pick the largest tile whose double-buffered adj row-tiles + resident H
    # fit the budget.  TODO(synk): sweep pl.Buffered(2..3) on the adj spec.
    tile_m = LANE
    for cand in (512, 256, 128):
        if (n_pad % cand == 0 and
                2 * cand * n_pad * adj_bytes + n_pad * p * cdt_bytes
                + (8 << 20) <= budget):
            tile_m = cand
            break

    emb_p = None
    rec_p = None
    h = x_p
    for l, (w, b) in enumerate(params):
        last_of_backbone = (l == num_enc - 1) or (l == n_layers - 1)
        w_p = pad2(w, p, p).astype(compute_dtype)
        b_row = jnp.pad(b, (0, p - b.shape[0])).astype(jnp.float32)[None, :]
        out_dtype = jnp.float32 if last_of_backbone else compute_dtype
        y = _gcn_layer_rowtiled(adj_p, h, w_p, b_row,
                                apply_relu=not last_of_backbone,
                                out_dtype=out_dtype,
                                compute_dtype=compute_dtype,
                                adj_dtype=adj_dtype,
                                tile_m=tile_m, vmem_limit=budget)
        if l == num_enc - 1:
            emb_p = y
            h = y.astype(compute_dtype)
        elif l == n_layers - 1:
            rec_p = y
        else:
            h = y
    return rec_p[:n, :in_dim], emb_p[:n, :hid_dim]


# ---------------------------------------------------------------------------
# Glue: parameter init and adjacency normalization.
# ---------------------------------------------------------------------------
def init_gcn_params(key, in_dim, hid_dim, out_dim, num_layers):
    """Glorot-uniform weights; small random biases (to exercise the bias path)."""
    dims = [in_dim] + [hid_dim] * (num_layers - 1) + [out_dim]
    params = []
    for i in range(num_layers):
        key, kw, kb = jax.random.split(key, 3)
        fan_in, fan_out = dims[i], dims[i + 1]
        limit = jnp.sqrt(6.0 / (fan_in + fan_out))
        w = jax.random.uniform(kw, (fan_in, fan_out), jnp.float32, -limit, limit)
        b = jax.random.uniform(kb, (fan_out,), jnp.float32, -0.1, 0.1)
        params.append((w, b))
    return params, key


def normalized_dense_adj(edge_index, num_nodes):
    """A_hat = D^-1/2 (A + I) D^-1/2, rows = targets, cols = sources.

    Diagonal is SET to 1 (PyG add_remaining_self_loops behaviour) so graphs
    that already contain self-loops are not double-counted.
    """
    src, dst = edge_index[0], edge_index[1]
    a = jnp.zeros((num_nodes, num_nodes), jnp.float32)
    a = a.at[dst, src].set(1.0)
    idx = jnp.arange(num_nodes)
    a = a.at[idx, idx].set(1.0)
    deg = a.sum(axis=1)
    dinv = jax.lax.rsqrt(jnp.maximum(deg, 1e-12))
    return a * dinv[:, None] * dinv[None, :]


# ---------------------------------------------------------------------------
# Pure-JAX references.
#   compute_dtype=None      -> exact module semantics in f32.
#   compute_dtype=bfloat16  -> matched-precision math (same casts as fused kernel).
# ---------------------------------------------------------------------------
def _ref_forward(x, adj, enc_params, dec_params, compute_dtype=None):
    def one_layer(h, w, b):
        if compute_dtype is None:
            return adj @ (h @ w) + b
        t = jnp.dot(h.astype(compute_dtype), w.astype(compute_dtype),
                    preferred_element_type=jnp.float32)
        y = jnp.dot(adj.astype(compute_dtype), t.astype(compute_dtype),
                    preferred_element_type=jnp.float32)
        return y + b

    def stack(h, params):
        for i, (w, b) in enumerate(params):
            h = one_layer(h, w, b)
            if i < len(params) - 1:
                h = jnp.maximum(h, 0.0)
        return h

    emb = stack(x, enc_params)
    return stack(emb, dec_params), emb


def _make_ring_graph(n):
    src = jnp.arange(n, dtype=jnp.int32)
    dst = (src + 1) % n
    edge_index = jnp.stack(
        [jnp.concatenate([src, dst]), jnp.concatenate([dst, src])], axis=0)
    return edge_index


def _rel(a, b):
    return float(jnp.linalg.norm(a - b) / (jnp.linalg.norm(b) + 1e-12))


if __name__ == "__main__":
    IN_DIM = 8
    HID_DIM = 32
    NUM_LAYERS = 4

    key = jax.random.PRNGKey(0)

    # Encoder: in->hid, hid->hid x3.  Decoder: hid->hid x3, hid->in.
    enc_params, key = init_gcn_params(key, IN_DIM, HID_DIM, HID_DIM, NUM_LAYERS)
    dec_params, key = init_gcn_params(key, HID_DIM, HID_DIM, IN_DIM, NUM_LAYERS)

    # ------------- Test 1: small graph, fused resident-adj path -------------
    N1 = 16
    key, kx = jax.random.split(key)
    x1 = jax.random.normal(kx, (N1, IN_DIM), jnp.float32)
    adj1 = normalized_dense_adj(_make_ring_graph(N1), N1)

    x_rec, emb = gcn_en_de_forward(x1, adj1, enc_params, dec_params,
                                   compute_dtype=jnp.bfloat16)
    x_rec = jax.block_until_ready(x_rec)
    emb = jax.block_until_ready(emb)
    assert x_rec.shape == (N1, IN_DIM) and emb.shape == (N1, HID_DIM)

    # Matched-precision reference (identical bf16 casts, f32 accumulation).
    x_rec_m, emb_m = _ref_forward(x1, adj1, enc_params, dec_params,
                                  compute_dtype=jnp.bfloat16)
    assert jnp.allclose(x_rec, x_rec_m, atol=1e-3, rtol=1e-3)
    assert jnp.allclose(emb, emb_m, atol=1e-3, rtol=1e-3)

    # Full-f32 semantic reference; loose norm-wise check (bf16 operands).
    x_rec_f, emb_f = _ref_forward(x1, adj1, enc_params, dec_params,
                                  compute_dtype=None)
    assert _rel(x_rec, x_rec_f) < 5e-2
    assert _rel(emb, emb_f) < 5e-2

    # ----------- Test 2: larger graph, forced streamed/tiled path -----------
    N2 = 200  # pads to 256 -> 2 row tiles of 128 on the 'parallel' grid axis
    key, kx = jax.random.split(key)
    x2 = jax.random.normal(kx, (N2, IN_DIM), jnp.float32)
    adj2 = normalized_dense_adj(_make_ring_graph(N2), N2)

    x_rec2, emb2 = gcn_en_de_forward(x2, adj2, enc_params, dec_params,
                                     compute_dtype=jnp.bfloat16,
                                     force_tiled=True)
    x_rec2 = jax.block_until_ready(x_rec2)
    emb2 = jax.block_until_ready(emb2)
    assert x_rec2.shape == (N2, IN_DIM) and emb2.shape == (N2, HID_DIM)

    x_rec2_f, emb2_f = _ref_forward(x2, adj2, enc_params, dec_params,
                                    compute_dtype=None)
    assert _rel(x_rec2, x_rec2_f) < 1e-1
    assert _rel(emb2, emb2_f) < 1e-1

    print("KERNEL_OK")
</pallas_src>

<mosaic_0001>
module attributes {stable_mosaic.version = 11 : i64} {
  func.func @_gcn_ende_fused_kernel(%arg0: memref<128x128xbf16, #tpu.memory_space<vmem>>, %arg1: memref<128x128xbf16, #tpu.memory_space<vmem>>, %arg2: memref<8x128x128xbf16, #tpu.memory_space<vmem>>, %arg3: memref<8x128xf32, #tpu.memory_space<vmem>>, %arg4: memref<128x128xf32, #tpu.memory_space<vmem>>, %arg5: memref<128x128xf32, #tpu.memory_space<vmem>>, %arg6: memref<128x128xbf16, #tpu.memory_space<vmem>>) attributes {dimension_semantics = [], scalar_prefetch = 0 : i64, scratch_operands = 1 : i64, tpu.core_type = #tpu.core_type<tc>} {
    %c0 = arith.constant 0 : index
    %c0_0 = arith.constant 0 : index
    %0 = vector.load %arg0[%c0, %c0_0] : memref<128x128xbf16, #tpu.memory_space<vmem>>, vector<128x128xbf16>
    %c0_1 = arith.constant 0 : index
    %c0_2 = arith.constant 0 : index
    %1 = vector.load %arg1[%c0_1, %c0_2] : memref<128x128xbf16, #tpu.memory_space<vmem>>, vector<128x128xbf16>
    %c0_3 = arith.constant 0 : index
    %c0_4 = arith.constant 0 : index
    %2 = vector.load %arg6[%c0_3, %c0_4] : memref<128x128xbf16, #tpu.memory_space<vmem>>, vector<128x128xbf16>
    tpu.vector_store %arg6[%c0_3, %c0_4], %1 {strides = array<i32>} : memref<128x128xbf16, #tpu.memory_space<vmem>>, vector<128x128xbf16>,
    %c0_5 = arith.constant 0 : index
    %c0_6 = arith.constant 0 : index
    %3 = vector.load %arg6[%c0_5, %c0_6] : memref<128x128xbf16, #tpu.memory_space<vmem>>, vector<128x128xbf16>
    %c0_7 = arith.constant 0 : index
    %c0_8 = arith.constant 0 : index
    %c0_9 = arith.constant 0 : index
    %4 = vector.load %arg2[%c0_7, %c0_8, %c0_9] : memref<8x128x128xbf16, #tpu.memory_space<vmem>>, vector<1x128x128xbf16>
    %5 = vector.shape_cast %4 : vector<1x128x128xbf16> to vector<128x128xbf16>
    %cst = arith.constant dense<0.000000e+00> : vector<128x128xf32>
    %6 = tpu.matmul %3, %5, %cst {dimension_numbers = #tpu.dot_dimension_numbers<[1], [0], [0], [1], [0, 0, 1, 1], [], []>} : vector<128x128xbf16>, vector<128x128xbf16>, vector<128x128xf32> -> vector<128x128xf32>
    %7 = arith.truncf %6 : vector<128x128xf32> to vector<128x128xbf16>
    %cst_10 = arith.constant dense<0.000000e+00> : vector<128x128xf32>
    %8 = tpu.matmul %0, %7, %cst_10 {dimension_numbers = #tpu.dot_dimension_numbers<[1], [0], [0], [1], [0, 0, 1, 1], [], []>} : vector<128x128xbf16>, vector<128x128xbf16>, vector<128x128xf32> -> vector<128x128xf32>
    %c0_11 = arith.constant 0 : index
    %c0_12 = arith.constant 0 : index
    %9 = vector.load %arg3[%c0_11, %c0_12] : memref<8x128xf32, #tpu.memory_space<vmem>>, vector<1x128xf32>
    %10 = vector.broadcast %9 : vector<1x128xf32> to vector<128x128xf32>
    %11 = arith.addf %8, %10 : vector<128x128xf32>
    %cst_13 = arith.constant 0.000000e+00 : f32
    %12 = vector.broadcast %cst_13 : f32 to vector<128x128xf32>
    %13 = arith.maximumf %11, %12 : vector<128x128xf32>
    %14 = arith.truncf %13 : vector<128x128xf32> to vector<128x128xbf16>
    %c0_14 = arith.constant 0 : index
    %c0_15 = arith.constant 0 : index
    %15 = vector.load %arg6[%c0_14, %c0_15] : memref<128x128xbf16, #tpu.memory_space<vmem>>, vector<128x128xbf16>
    tpu.vector_store %arg6[%c0_14, %c0_15], %14 {strides = array<i32>} : memref<128x128xbf16, #tpu.memory_space<vmem>>, vector<128x128xbf16>,
    %c0_16 = arith.constant 0 : index
    %c0_17 = arith.constant 0 : index
    %16 = vector.load %arg6[%c0_16, %c0_17] : memref<128x128xbf16, #tpu.memory_space<vmem>>, vector<128x128xbf16>
    %c1 = arith.constant 1 : index
    %c0_18 = arith.constant 0 : index
    %c0_19 = arith.constant 0 : index
    %17 = vector.load %arg2[%c1, %c0_18, %c0_19] : memref<8x128x128xbf16, #tpu.memory_space<vmem>>, vector<1x128x128xbf16>
    %18 = vector.shape_cast %17 : vector<1x128x128xbf16> to vector<128x128xbf16>
    %cst_20 = arith.constant dense<0.000000e+00> : vector<128x128xf32>
    %19 = tpu.matmul %16, %18, %cst_20 {dimension_numbers = #tpu.dot_dimension_numbers<[1], [0], [0], [1], [0, 0, 1, 1], [], []>} : vector<128x128xbf16>, vector<128x128xbf16>, vector<128x128xf32> -> vector<128x128xf32>
    %20 = arith.truncf %19 : vector<128x128xf32> to vector<128x128xbf16>
    %cst_21 = arith.constant dense<0.000000e+00> : vector<128x128xf32>
    %21 = tpu.matmul %0, %20, %cst_21 {dimension_numbers = #tpu.dot_dimension_numbers<[1], [0], [0], [1], [0, 0, 1, 1], [], []>} : vector<128x128xbf16>, vector<128x128xbf16>, vector<128x128xf32> -> vector<128x128xf32>
    %c1_22 = arith.constant 1 : index
    %c0_23 = arith.constant 0 : index
    %22 = vector.load %arg3[%c1_22, %c0_23] : memref<8x128xf32, #tpu.memory_space<vmem>>, vector<1x128xf32>
    %23 = vector.broadcast %22 : vector<1x128xf32> to vector<128x128xf32>
    %24 = arith.addf %21, %23 : vector<128x128xf32>
    %cst_24 = arith.constant 0.000000e+00 : f32
    %25 = vector.broadcast %cst_24 : f32 to vector<128x128xf32>
    %26 = arith.maximumf %24, %25 : vector<128x128xf32>
    %27 = arith.truncf %26 : vector<128x128xf32> to vector<128x128xbf16>
    %c0_25 = arith.constant 0 : index
    %c0_26 = arith.constant 0 : index
    %28 = vector.load %arg6[%c0_25, %c0_26] : memref<128x128xbf16, #tpu.memory_space<vmem>>, vector<128x128xbf16>
    tpu.vector_store %arg6[%c0_25, %c0_26], %27 {strides = array<i32>} : memref<128x128xbf16, #tpu.memory_space<vmem>>, vector<128x128xbf16>,
    %c0_27 = arith.constant 0 : index
    %c0_28 = arith.constant 0 : index
    %29 = vector.load %arg6[%c0_27, %c0_28] : memref<128x128xbf16, #tpu.memory_space<vmem>>, vector<128x128xbf16>
    %c2 = arith.constant 2 : index
    %c0_29 = arith.constant 0 : index
    %c0_30 = arith.constant 0 : index
    %30 = vector.load %arg2[%c2, %c0_29, %c0_30] : memref<8x128x128xbf16, #tpu.memory_space<vmem>>, vector<1x128x128xbf16>
    %31 = vector.shape_cast %30 : vector<1x128x128xbf16> to vector<128x128xbf16>
    %cst_31 = arith.constant dense<0.000000e+00> : vector<128x128xf32>
    %32 = tpu.matmul %29, %31, %cst_31 {dimension_numbers = #tpu.dot_dimension_numbers<[1], [0], [0], [1], [0, 0, 1, 1], [], []>} : vector<128x128xbf16>, vector<128x128xbf16>, vector<128x128xf32> -> vector<128x128xf32>
    %33 = arith.truncf %32 : vector<128x128xf32> to vector<128x128xbf16>
    %cst_32 = arith.constant dense<0.000000e+00> : vector<128x128xf32>
    %34 = tpu.matmul %0, %33, %cst_32 {dimension_numbers = #tpu.dot_dimension_numbers<[1], [0], [0], [1], [0, 0, 1, 1], [], []>} : vector<128x128xbf16>, vector<128x128xbf16>, vector<128x128xf32> -> vector<128x128xf32>
    %c2_33 = arith.constant 2 : index
    %c0_34 = arith.constant 0 : index
    %35 = vector.load %arg3[%c2_33, %c0_34] : memref<8x128xf32, #tpu.memory_space<vmem>>, vector<1x128xf32>
    %36 = vector.broadcast %35 : vector<1x128xf32> to vector<128x128xf32>
    %37 = arith.addf %34, %36 : vector<128x128xf32>
    %cst_35 = arith.constant 0.000000e+00 : f32
    %38 = vector.broadcast %cst_35 : f32 to vector<128x128xf32>
    %39 = arith.maximumf %37, %38 : vector<128x128xf32>
    %40 = arith.truncf %39 : vector<128x128xf32> to vector<128x128xbf16>
    %c0_36 = arith.constant 0 : index
    %c0_37 = arith.constant 0 : index
    %41 = vector.load %arg6[%c0_36, %c0_37] : memref<128x128xbf16, #tpu.memory_space<vmem>>, vector<128x128xbf16>
    tpu.vector_store %arg6[%c0_36, %c0_37], %40 {strides = array<i32>} : memref<128x128xbf16, #tpu.memory_space<vmem>>, vector<128x128xbf16>,
    %c0_38 = arith.constant 0 : index
    %c0_39 = arith.constant 0 : index
    %42 = vector.load %arg6[%c0_38, %c0_39] : memref<128x128xbf16, #tpu.memory_space<vmem>>, vector<128x128xbf16>
    %c3 = arith.constant 3 : index
    %c0_40 = arith.constant 0 : index
    %c0_41 = arith.constant 0 : index
    %43 = vector.load %arg2[%c3, %c0_40, %c0_41] : memref<8x128x128xbf16, #tpu.memory_space<vmem>>, vector<1x128x128xbf16>
    %44 = vector.shape_cast %43 : vector<1x128x128xbf16> to vector<128x128xbf16>
    %cst_42 = arith.constant dense<0.000000e+00> : vector<128x128xf32>
    %45 = tpu.matmul %42, %44, %cst_42 {dimension_numbers = #tpu.dot_dimension_numbers<[1], [0], [0], [1], [0, 0, 1, 1], [], []>} : vector<128x128xbf16>, vector<128x128xbf16>, vector<128x128xf32> -> vector<128x128xf32>
    %46 = arith.truncf %45 : vector<128x128xf32> to vector<128x128xbf16>
    %cst_43 = arith.constant dense<0.000000e+00> : vector<128x128xf32>
    %47 = tpu.matmul %0, %46, %cst_43 {dimension_numbers = #tpu.dot_dimension_numbers<[1], [0], [0], [1], [0, 0, 1, 1], [], []>} : vector<128x128xbf16>, vector<128x128xbf16>, vector<128x128xf32> -> vector<128x128xf32>
    %c3_44 = arith.constant 3 : index
    %c0_45 = arith.constant 0 : index
    %48 = vector.load %arg3[%c3_44, %c0_45] : memref<8x128xf32, #tpu.memory_space<vmem>>, vector<1x128xf32>
    %49 = vector.broadcast %48 : vector<1x128xf32> to vector<128x128xf32>
    %50 = arith.addf %47, %49 : vector<128x128xf32>
    %c0_46 = arith.constant 0 : index
    %c0_47 = arith.constant 0 : index
    %51 = vector.load %arg4[%c0_46, %c0_47] : memref<128x128xf32, #tpu.memory_space<vmem>>, vector<128x128xf32>
    tpu.vector_store %arg4[%c0_46, %c0_47], %50 {strides = array<i32>} : memref<128x128xf32, #tpu.memory_space<vmem>>, vector<128x128xf32>,
    %52 = arith.truncf %50 : vector<128x128xf32> to vector<128x128xbf16>
    %c0_48 = arith.constant 0 : index
    %c0_49 = arith.constant 0 : index
    %53 = vector.load %arg6[%c0_48, %c0_49] : memref<128x128xbf16, #tpu.memory_space<vmem>>, vector<128x128xbf16>
    tpu.vector_store %arg6[%c0_48, %c0_49], %52 {strides = array<i32>} : memref<128x128xbf16, #tpu.memory_space<vmem>>, vector<128x128xbf16>,
    %c0_50 = arith.constant 0 : index
    %c0_51 = arith.constant 0 : index
    %54 = vector.load %arg6[%c0_50, %c0_51] : memref<128x128xbf16, #tpu.memory_space<vmem>>, vector<128x128xbf16>
    %c4 = arith.constant 4 : index
    %c0_52 = arith.constant 0 : index
    %c0_53 = arith.constant 0 : index
    %55 = vector.load %arg2[%c4, %c0_52, %c0_53] : memref<8x128x128xbf16, #tpu.memory_space<vmem>>, vector<1x128x128xbf16>
    %56 = vector.shape_cast %55 : vector<1x128x128xbf16> to vector<128x128xbf16>
    %cst_54 = arith.constant dense<0.000000e+00> : vector<128x128xf32>
    %57 = tpu.matmul %54, %56, %cst_54 {dimension_numbers = #tpu.dot_dimension_numbers<[1], [0], [0], [1], [0, 0, 1, 1], [], []>} : vector<128x128xbf16>, vector<128x128xbf16>, vector<128x128xf32> -> vector<128x128xf32>
    %58 = arith.truncf %57 : vector<128x128xf32> to vector<128x128xbf16>
    %cst_55 = arith.constant dense<0.000000e+00> : vector<128x128xf32>
    %59 = tpu.matmul %0, %58, %cst_55 {dimension_numbers = #tpu.dot_dimension_numbers<[1], [0], [0], [1], [0, 0, 1, 1], [], []>} : vector<128x128xbf16>, vector<128x128xbf16>, vector<128x128xf32> -> vector<128x128xf32>
    %c4_56 = arith.constant 4 : index
    %c0_57 = arith.constant 0 : index
    %60 = vector.load %arg3[%c4_56, %c0_57] : memref<8x128xf32, #tpu.memory_space<vmem>>, vector<1x128xf32>
    %61 = vector.broadcast %60 : vector<1x128xf32> to vector<128x128xf32>
    %62 = arith.addf %59, %61 : vector<128x128xf32>
    %cst_58 = arith.constant 0.000000e+00 : f32
    %63 = vector.broadcast %cst_58 : f32 to vector<128x128xf32>
    %64 = arith.maximumf %62, %63 : vector<128x128xf32>
    %65 = arith.truncf %64 : vector<128x128xf32> to vector<128x128xbf16>
    %c0_59 = arith.constant 0 : index
    %c0_60 = arith.constant 0 : index
    %66 = vector.load %arg6[%c0_59, %c0_60] : memref<128x128xbf16, #tpu.memory_space<vmem>>, vector<128x128xbf16>
    tpu.vector_store %arg6[%c0_59, %c0_60], %65 {strides = array<i32>} : memref<128x128xbf16, #tpu.memory_space<vmem>>, vector<128x128xbf16>,
    %c0_61 = arith.constant 0 : index
    %c0_62 = arith.constant 0 : index
    %67 = vector.load %arg6[%c0_61, %c0_62] : memref<128x128xbf16, #tpu.memory_space<vmem>>, vector<128x128xbf16>
    %c5 = arith.constant 5 : index
    %c0_63 = arith.constant 0 : index
    %c0_64 = arith.constant 0 : index
    %68 = vector.load %arg2[%c5, %c0_63, %c0_64] : memref<8x128x128xbf16, #tpu.memory_space<vmem>>, vector<1x128x128xbf16>
    %69 = vector.shape_cast %68 : vector<1x128x128xbf16> to vector<128x128xbf16>
    %cst_65 = arith.constant dense<0.000000e+00> : vector<128x128xf32>
    %70 = tpu.matmul %67, %69, %cst_65 {dimension_numbers = #tpu.dot_dimension_numbers<[1], [0], [0], [1], [0, 0, 1, 1], [], []>} : vector<128x128xbf16>, vector<128x128xbf16>, vector<128x128xf32> -> vector<128x128xf32>
    %71 = arith.truncf %70 : vector<128x128xf32> to vector<128x128xbf16>
    %cst_66 = arith.constant dense<0.000000e+00> : vector<128x128xf32>
    %72 = tpu.matmul %0, %71, %cst_66 {dimension_numbers = #tpu.dot_dimension_numbers<[1], [0], [0], [1], [0, 0, 1, 1], [], []>} : vector<128x128xbf16>, vector<128x128xbf16>, vector<128x128xf32> -> vector<128x128xf32>
    %c5_67 = arith.constant 5 : index
    %c0_68 = arith.constant 0 : index
    %73 = vector.load %arg3[%c5_67, %c0_68] : memref<8x128xf32, #tpu.memory_space<vmem>>, vector<1x128xf32>
    %74 = vector.broadcast %73 : vector<1x128xf32> to vector<128x128xf32>
    %75 = arith.addf %72, %74 : vector<128x128xf32>
    %cst_69 = arith.constant 0.000000e+00 : f32
    %76 = vector.broadcast %cst_69 : f32 to vector<128x128xf32>
    %77 = arith.maximumf %75, %76 : vector<128x128xf32>
    %78 = arith.truncf %77 : vector<128x128xf32> to vector<128x128xbf16>
    %c0_70 = arith.constant 0 : index
    %c0_71 = arith.constant 0 : index
    %79 = vector.load %arg6[%c0_70, %c0_71] : memref<128x128xbf16, #tpu.memory_space<vmem>>, vector<128x128xbf16>
    tpu.vector_store %arg6[%c0_70, %c0_71], %78 {strides = array<i32>} : memref<128x128xbf16, #tpu.memory_space<vmem>>, vector<128x128xbf16>,
    %c0_72 = arith.constant 0 : index
    %c0_73 = arith.constant 0 : index
    %80 = vector.load %arg6[%c0_72, %c0_73] : memref<128x128xbf16, #tpu.memory_space<vmem>>, vector<128x128xbf16>
    %c6 = arith.constant 6 : index
    %c0_74 = arith.constant 0 : index
    %c0_75 = arith.constant 0 : index
    %81 = vector.load %arg2[%c6, %c0_74, %c0_75] : memref<8x128x128xbf16, #tpu.memory_space<vmem>>, vector<1x128x128xbf16>
    %82 = vector.shape_cast %81 : vector<1x128x128xbf16> to vector<128x128xbf16>
    %cst_76 = arith.constant dense<0.000000e+00> : vector<128x128xf32>
    %83 = tpu.matmul %80, %82, %cst_76 {dimension_numbers = #tpu.dot_dimension_numbers<[1], [0], [0], [1], [0, 0, 1, 1], [], []>} : vector<128x128xbf16>, vector<128x128xbf16>, vector<128x128xf32> -> vector<128x128xf32>
    %84 = arith.truncf %83 : vector<128x128xf32> to vector<128x128xbf16>
    %cst_77 = arith.constant dense<0.000000e+00> : vector<128x128xf32>
    %85 = tpu.matmul %0, %84, %cst_77 {dimension_numbers = #tpu.dot_dimension_numbers<[1], [0], [0], [1], [0, 0, 1, 1], [], []>} : vector<128x128xbf16>, vector<128x128xbf16>, vector<128x128xf32> -> vector<128x128xf32>
    %c6_78 = arith.constant 6 : index
    %c0_79 = arith.constant 0 : index
    %86 = vector.load %arg3[%c6_78, %c0_79] : memref<8x128xf32, #tpu.memory_space<vmem>>, vector<1x128xf32>
    %87 = vector.broadcast %86 : vector<1x128xf32> to vector<128x128xf32>
    %88 = arith.addf %85, %87 : vector<128x128xf32>
    %cst_80 = arith.constant 0.000000e+00 : f32
    %89 = vector.broadcast %cst_80 : f32 to vector<128x128xf32>
    %90 = arith.maximumf %88, %89 : vector<128x128xf32>
    %91 = arith.truncf %90 : vector<128x128xf32> to vector<128x128xbf16>
    %c0_81 = arith.constant 0 : index
    %c0_82 = arith.constant 0 : index
    %92 = vector.load %arg6[%c0_81, %c0_82] : memref<128x128xbf16, #tpu.memory_space<vmem>>, vector<128x128xbf16>
    tpu.vector_store %arg6[%c0_81, %c0_82], %91 {strides = array<i32>} : memref<128x128xbf16, #tpu.memory_space<vmem>>, vector<128x128xbf16>,
    %c0_83 = arith.constant 0 : index
    %c0_84 = arith.constant 0 : index
    %93 = vector.load %arg6[%c0_83, %c0_84] : memref<128x128xbf16, #tpu.memory_space<vmem>>, vector<128x128xbf16>
    %c7 = arith.constant 7 : index
    %c0_85 = arith.constant 0 : index
    %c0_86 = arith.constant 0 : index
    %94 = vector.load %arg2[%c7, %c0_85, %c0_86] : memref<8x128x128xbf16, #tpu.memory_space<vmem>>, vector<1x128x128xbf16>
    %95 = vector.shape_cast %94 : vector<1x128x128xbf16> to vector<128x128xbf16>
    %cst_87 = arith.constant dense<0.000000e+00> : vector<128x128xf32>
    %96 = tpu.matmul %93, %95, %cst_87 {dimension_numbers = #tpu.dot_dimension_numbers<[1], [0], [0], [1], [0, 0, 1, 1], [], []>} : vector<128x128xbf16>, vector<128x128xbf16>, vector<128x128xf32> -> vector<128x128xf32>
    %97 = arith.truncf %96 : vector<128x128xf32> to vector<128x128xbf16>
    %cst_88 = arith.constant dense<0.000000e+00> : vector<128x128xf32>
    %98 = tpu.matmul %0, %97, %cst_88 {dimension_numbers = #tpu.dot_dimension_numbers<[1], [0], [0], [1], [0, 0, 1, 1], [], []>} : vector<128x128xbf16>, vector<128x128xbf16>, vector<128x128xf32> -> vector<128x128xf32>
    %c7_89 = arith.constant 7 : index
    %c0_90 = arith.constant 0 : index
    %99 = vector.load %arg3[%c7_89, %c0_90] : memref<8x128xf32, #tpu.memory_space<vmem>>, vector<1x128xf32>
    %100 = vector.broadcast %99 : vector<1x128xf32> to vector<128x128xf32>
    %101 = arith.addf %98, %100 : vector<128x128xf32>
    %c0_91 = arith.constant 0 : index
    %c0_92 = arith.constant 0 : index
    %102 = vector.load %arg5[%c0_91, %c0_92] : memref<128x128xf32, #tpu.memory_space<vmem>>, vector<128x128xf32>
    tpu.vector_store %arg5[%c0_91, %c0_92], %101 {strides = array<i32>} : memref<128x128xf32, #tpu.memory_space<vmem>>, vector<128x128xf32>,
    return
  }
}

</mosaic_0001>

<bundles_post_ra>
// kernel: tpu_custom_call.1
= control target key start
LH: loop header
LB: loop body
LE: loop exit
PB: predicated region body
PF: predicated region fallthrough
CT: control target
= control target key end

     0   :  { %11 = vsyncpa [#allocation4], 0  ;;  %s4024_s0 = inlined_call_operand.hbm [shape: bf16[128,128], index: 0, kind: input, shape index: {}]   ;;  %s4025_s1 = inlined_call_operand.hbm [shape: bf16[128,128], index: 1, kind: input, shape index: {}]   ;;  %s4026_s2 = inlined_call_operand.hbm [shape: bf16[8,128,128], index: 2, kind: input, shape index: {}]   ;;  %s4027_s3 = inlined_call_operand.vmem [shape: f32[8,128], index: 3, kind: input, shape index: {}]   ;;  %s4028_s4 = inlined_call_operand.hbm [shape: f32[128,128], index: 4, kind: output, shape index: {0}]   ;;  %s4029_s5 = inlined_call_operand.hbm [shape: f32[128,128], index: 5, kind: output, shape index: {1}]  }
   0x1   :  { %12 = vsyncpa [#allocation7], 0 }
   0x2   :  { %13 = vsyncpa [#allocation5], 0 }
   0x3   :  { %14 = vsyncpa [#allocation11], 0  ;;  %s3783_s18 = smov [#allocation6]   ;;  %s3784_s20 = smov [#allocation3]  }
   0x4   :  { %s32_s19 = sshll.u32 %s3783_s18, 4  ;;  %s20_s21 = sshll.u32 %s3784_s20, 4  ;;  %s33_s19 = int_to_ptr.vmem [resolvable:$true] %s32_s19  ;;  %s3822_s21 = int_to_ptr.vmem [resolvable:$true] %s20_s21 }
   0x5   :  { %s3665_s24 = scalar_lea.hbm %s4025_s1, 1024 }
   0x6   :  { %p3666_p0 = scmp.ne.s32.totalorder %s4025_s1, %s3665_s24  ;;  %p3669_p1 = scmp.lt.u32.totalorder %s3665_s24, %s4025_s1 }
   0x8   :  { %p3671_p2 = pnand %p3669_p1, %p3666_p0 }
   0xa   :  { %3674 = shalt.err (!%p3671_p2)
}
   0xb   :  { %s3675_s29 = scalar_lea.vmem %s33_s19, 1024  ;;  %p3680_p4 = scmp.lt.s32.totalorder %s33_s19, %s33_s19 }
   0xc   :  { %p3676_p3 = scmp.ne.s32.totalorder %s33_s19, %s3675_s29  ;;  %p3681_p5 = scmp.lt.s32.totalorder %s3675_s29, %s3675_s29 }
   0xe   :  { %p3682_p6 = por %p3681_p5, %p3680_p4 }
  0x10   :  { %p3683_p7 = pnand %p3682_p6, %p3676_p3 }
  0x12   :  { %3686 = shalt.err (!%p3683_p7)
}
  0x13   :  { %s3785_s30 = smov 64   ;;  %s3786_s6 = smov 4  }
  0x14   :  { %38 = dma.hbm_to_vmem [thread:$0]  %s4025_s1, 1024, %s33_s19, [#allocation7], %s3785_s30, %s3785_s30, %s3786_s6  }
  0x15   :  { %s3687_s11 = scalar_lea.hbm %s4024_s0, 1024 }
  0x16   :  { %p3688_p8 = scmp.ne.s32.totalorder %s4024_s0, %s3687_s11  ;;  %p3691_p9 = scmp.lt.u32.totalorder %s3687_s11, %s4024_s0 }
  0x18   :  { %p3693_p10 = pnand %p3691_p9, %p3688_p8 }
  0x1a   :  { %3696 = shalt.err (!%p3693_p10)
}
  0x1b   :  { %s3697_s16 = scalar_lea.vmem %s3822_s21, 1024  ;;  %p3702_p12 = scmp.lt.s32.totalorder %s3822_s21, %s3822_s21 }
  0x1c   :  { %p3698_p11 = scmp.ne.s32.totalorder %s3822_s21, %s3697_s16  ;;  %p3703_p13 = scmp.lt.s32.totalorder %s3697_s16, %s3697_s16 }
  0x1e   :  { %p3704_p0 = por %p3703_p13, %p3702_p12 }
  0x20   :  { %p3705_p1 = pnand %p3704_p0, %p3698_p11 }
  0x22   :  { %3708 = shalt.err (!%p3705_p1)
}
  0x23   :  { %26 = dma.hbm_to_vmem [thread:$0]  %s4024_s0, 1024, %s3822_s21, [#allocation4], %s3785_s30, %s3785_s30, %s3786_s6  }
  0x24   :  { %s3787_s18 = smov [#allocation8]   ;;  %s3709_s23 = scalar_lea.hbm %s4026_s2, 8192 }
  0x25   :  { %s44_s19 = sshll.u32 %s3787_s18, 4  ;;  %p3710_p2 = scmp.ne.s32.totalorder %s4026_s2, %s3709_s23  ;;  %s45_s19 = int_to_ptr.vmem [resolvable:$true] %s44_s19 }
  0x26   :  { %p3713_p3 = scmp.lt.u32.totalorder %s3709_s23, %s4026_s2 }
  0x28   :  { %p3715_p4 = pnand %p3713_p3, %p3710_p2 }
  0x2a   :  { %3718 = shalt.err (!%p3715_p4)
}
  0x2b   :  { %s3719_s28 = scalar_lea.vmem %s45_s19, 8192  ;;  %p3724_p6 = scmp.lt.s32.totalorder %s45_s19, %s45_s19 }
  0x2c   :  { %p3720_p5 = scmp.ne.s32.totalorder %s45_s19, %s3719_s28  ;;  %p3725_p7 = scmp.lt.s32.totalorder %s3719_s28, %s3719_s28 }
  0x2e   :  { %p3726_p8 = por %p3725_p7, %p3724_p6 }
  0x30   :  { %p3727_p9 = pnand %p3726_p8, %p3720_p5 }
  0x32   :  { %3730 = shalt.err (!%p3727_p9)
}
  0x33   :  { %50 = dma.hbm_to_vmem [thread:$0]  %s4026_s2, 8192, %s45_s19, [#allocation7], %s3785_s30, %s3785_s30, %s3786_s6  }
  0x34   :  { %3775 = dma.done.wait [#allocation4], 1024  }
  0x35   :  { %3776 = vsyncadd [#allocation4], 4294966272 }
  0x36   :  { %3777 = dma.done.wait [#allocation7], 9216  }
  0x37   :  { %3778 = vsyncadd [#allocation7], 4294958080  ;;  %v3577_v0 = vld [vmem:[#allocation8] sm:$0xff]   ;;  %v3578_v1 = vld [vmem:[#allocation8 + $0x8] sm:$0xff]   ;;  %s3788_s1 = smov [#allocation9]  }
  0x38   :  { %3056 = vmatprep.subr.bf16.mxu0 %v3577_v0  ;;  %v3579_v2 = vld [vmem:[#allocation8 + $0x10] sm:$0xff]   ;;  %v3580_v3 = vld [vmem:[#allocation8 + $0x18] sm:$0xff]   ;;  %v3585_v4 = vld [vmem:[#allocation6] sm:$0xff]   ;;  %s2683_s17 = sshll.u32 %s3788_s1, 4  ;;  %s2684_s17 = int_to_ptr.vmem [resolvable:$true] %s2683_s17 }
  0x39   :  { %3057 = vmatpush3.bf16.msra.mxu0 %v3577_v0  ;;  %3072 = vmatprep.mubr.bf16.mxu0 %v3585_v4  ;;  %v3581_v5 = vld [vmem:[#allocation8 + $0x20] sm:$0xff]   ;;  %v3582_v6 = vld [vmem:[#allocation8 + $0x28] sm:$0xff]   ;;  %v3583_v7 = vld [vmem:[#allocation8 + $0x30] sm:$0xff]   ;;  %s3731_s18 = scalar_lea.vmem %s2684_s17, 2048  ;;  %p3736_p11 = scmp.lt.s32.totalorder %s2684_s17, %s2684_s17 }
  0x3a   :  { %3058 = vmatprep.subr.bf16.mxu0 %v3578_v1  ;;  %v3584_v8 = vld [vmem:[#allocation8 + $0x38] sm:$0xff]   ;;  %v3586_v9 = vld [vmem:[#allocation6 + $0x8] sm:$0xff]   ;;  %v3587_v10 = vld [vmem:[#allocation6 + $0x10] sm:$0xff]   ;;  %p3732_p10 = scmp.ne.s32.totalorder %s2684_s17, %s3731_s18  ;;  %p3737_p12 = scmp.lt.s32.totalorder %s3731_s18, %s3731_s18 }
  0x3b   :  { %v3588_v11 = vld [vmem:[#allocation6 + $0x18] sm:$0xff]   ;;  %v3589_v12 = vld [vmem:[#allocation6 + $0x20] sm:$0xff]   ;;  %v3590_v13 = vld [vmem:[#allocation6 + $0x28] sm:$0xff]  }
  0x3c   :  { %v3591_v14 = vld [vmem:[#allocation6 + $0x30] sm:$0xff]   ;;  %v3592_v15 = vld [vmem:[#allocation6 + $0x38] sm:$0xff]   ;;  %v3874_v16 = vld [vmem:[#allocation3] sm:$0xff]   ;;  %p3738_p13 = por %p3737_p12, %p3736_p11 }
  0x3d   :  { %3059 = vmatpush3.bf16.msra.mxu0 %v3578_v1  ;;  %3104 = vmatprep.mubr.bf16.mxu1 %v3874_v16  ;;  %v3601_v17 = vld [vmem:[#allocation8 + $0x40] sm:$0xff]   ;;  %v3602_v18 = vld [vmem:[#allocation8 + $0x48] sm:$0xff]   ;;  %v3603_v19 = vld [vmem:[#allocation8 + $0x50] sm:$0xff]  }
  0x3e   :  { %3060 = vmatprep.subr.bf16.mxu0 %v3579_v2  ;;  %v3604_v20 = vld [vmem:[#allocation8 + $0x58] sm:$0xff]   ;;  %v3605_v21 = vld [vmem:[#allocation8 + $0x60] sm:$0xff]   ;;  %v3606_v22 = vld [vmem:[#allocation8 + $0x68] sm:$0xff]   ;;  %p3739_p0 = pnand %p3738_p13, %p3732_p10 }
  0x3f   :  { %v3877_v47 = vld [vmem:[#allocation3 + $0x8] sm:$0xff]   ;;  %v3879_v48 = vld [vmem:[#allocation3 + $0x10] sm:$0xff]   ;;  %v3883_v49 = vld [vmem:[#allocation3 + $0x18] sm:$0xff]  }
  0x40   :  { %v3885_v50 = vld [vmem:[#allocation3 + $0x20] sm:$0xff]   ;;  %v3889_v51 = vld [vmem:[#allocation3 + $0x28] sm:$0xff]   ;;  %v3891_v52 = vld [vmem:[#allocation3 + $0x30] sm:$0xff]  }
  0x41   :  { %3061 = vmatpush3.bf16.msra.mxu0 %v3579_v2  ;;  %v3895_v53 = vld [vmem:[#allocation3 + $0x38] sm:$0xff]   ;;  %v3607_v54 = vld [vmem:[#allocation8 + $0x70] sm:$0xff]   ;;  %v2728_v56 = vld [vmem:[%s4027_s3] ss:$0 sm:$0xff] }
  0x42   :  { %3062 = vmatprep.subr.bf16.mxu0 %v3580_v3  ;;  %v3608_v55 = vld [vmem:[#allocation8 + $0x78] sm:$0xff]  }
  0x45   :  { %3063 = vmatpush3.bf16.msra.mxu0 %v3580_v3 }
  0x46   :  { %3064 = vmatprep.subr.bf16.mxu0 %v3581_v5 }
  0x49   :  { %3065 = vmatpush3.bf16.msra.mxu0 %v3581_v5 }
  0x4a   :  { %3066 = vmatprep.subr.bf16.mxu0 %v3582_v6 }
  0x4d   :  { %3067 = vmatpush3.bf16.msra.mxu0 %v3582_v6 }
  0x4e   :  { %3068 = vmatprep.subr.bf16.mxu0 %v3583_v7 }
  0x51   :  { %3069 = vmatpush3.bf16.msra.mxu0 %v3583_v7 }
  0x52   :  { %3070 = vmatprep.subr.bf16.mxu0 %v3584_v8 }
  0x55   :  { %3071 = vmatpush3.bf16.msra.mxu0 %v3584_v8 }
  0x56   :  { %3120 = vmatprep.subr.bf16.mxu0 %v3601_v17 }
  0x58   :  { %3073 = vmatmul.mubr.bf16.vlgmr.msra.gmra.mrb[0].mxu0 %v3586_v9 }
  0x59   :  { %3076 = vmatprep.mubr.bf16.mxu0 %v3587_v10  ;;  %3121 = vmatpush3.bf16.msra.mxu0 %v3601_v17 }
  0x5a   :  { %3122 = vmatprep.subr.bf16.mxu0 %v3602_v18 }
  0x5d   :  { %3123 = vmatpush3.bf16.msra.mxu0 %v3602_v18 }
  0x5e   :  { %3124 = vmatprep.subr.bf16.mxu0 %v3603_v19 }
  0x60   :  { %3077 = vmatmul.mubr.bf16.gmra.mrb[4].mxu0 %v3588_v11 }
  0x61   :  { %3080 = vmatprep.mubr.bf16.mxu0 %v3589_v12  ;;  %3125 = vmatpush3.bf16.msra.mxu0 %v3603_v19 }
  0x62   :  { %3126 = vmatprep.subr.bf16.mxu0 %v3604_v20 }
  0x65   :  { %3127 = vmatpush3.bf16.msra.mxu0 %v3604_v20 }
  0x66   :  { %3128 = vmatprep.subr.bf16.mxu0 %v3605_v21 }
  0x68   :  { %3081 = vmatmul.mubr.bf16.gmra.mrb[8].mxu0 %v3590_v13 }
  0x69   :  { %3084 = vmatprep.mubr.bf16.mxu0 %v3591_v14  ;;  %3129 = vmatpush3.bf16.msra.mxu0 %v3605_v21 }
  0x6a   :  { %3130 = vmatprep.subr.bf16.mxu0 %v3606_v22 }
  0x6d   :  { %3131 = vmatpush3.bf16.msra.mxu0 %v3606_v22 }
  0x6e   :  { %3132 = vmatprep.subr.bf16.mxu0 %v3607_v54 }
  0x70   :  { %3085 = vmatmul.mubr.bf16.gmra.mrb[12].mxu0 %v3592_v15 }
  0x71   :  { %3133 = vmatpush3.bf16.msra.mxu0 %v3607_v54 }
  0x72   :  { %3134 = vmatprep.subr.bf16.mxu0 %v3608_v55 }
  0x75   :  { %3135 = vmatpush3.bf16.msra.mxu0 %v3608_v55 }
 0x12b   :  { %v3074_v23 = vpop.f32.mrb[0].mxu0 }
 0x12c   :  { %v257_v24 = vpop.f32.mrb[1].mxu0 }
 0x12d   :  { %v3075_v25 = vpop.f32.mrb[2].mxu0 }
 0x12e   :  { %v321_v26 = vpack.c.bf16 %v3075_v25, %v3074_v23  ;;  %v260_v27 = vpop.f32.mrb[3].mxu0 }
 0x12f   :  { %v320_v28 = vpack.c.bf16 %v260_v27, %v257_v24 }
 0x131   :  { %3088 = vmatprep.subr.bf16.mxu1 %v320_v28 }
 0x132   :  { %3089 = vmatpush3.bf16.msra.mxu1 %v320_v28 }
 0x133   :  { %v3078_v29 = vpop.f32.mrb[4].mxu0  ;;  %3090 = vmatprep.subr.bf16.mxu1 %v321_v26 }
 0x134   :  { %v273_v30 = vpop.f32.mrb[5].mxu0 }
 0x135   :  { %v3079_v31 = vpop.f32.mrb[6].mxu0 }
 0x136   :  { %v323_v32 = vpack.c.bf16 %v3079_v31, %v3078_v29  ;;  %v276_v33 = vpop.f32.mrb[7].mxu0  ;;  %3091 = vmatpush3.bf16.msra.mxu1 %v321_v26 }
 0x137   :  { %v322_v34 = vpack.c.bf16 %v276_v33, %v273_v30 }
 0x139   :  { %3092 = vmatprep.subr.bf16.mxu1 %v322_v34 }
 0x13a   :  { %3093 = vmatpush3.bf16.msra.mxu1 %v322_v34 }
 0x13b   :  { %v3082_v35 = vpop.f32.mrb[8].mxu0  ;;  %3094 = vmatprep.subr.bf16.mxu1 %v323_v32 }
 0x13c   :  { %v289_v36 = vpop.f32.mrb[9].mxu0 }
 0x13d   :  { %v3083_v37 = vpop.f32.mrb[10].mxu0 }
 0x13e   :  { %v325_v38 = vpack.c.bf16 %v3083_v37, %v3082_v35  ;;  %v292_v39 = vpop.f32.mrb[11].mxu0  ;;  %3095 = vmatpush3.bf16.msra.mxu1 %v323_v32 }
 0x13f   :  { %v324_v40 = vpack.c.bf16 %v292_v39, %v289_v36 }
 0x141   :  { %3096 = vmatprep.subr.bf16.mxu1 %v324_v40 }
 0x142   :  { %3097 = vmatpush3.bf16.msra.mxu1 %v324_v40 }
 0x143   :  { %v3086_v41 = vpop.f32.mrb[12].mxu0  ;;  %3098 = vmatprep.subr.bf16.mxu1 %v325_v38 }
 0x144   :  { %v305_v42 = vpop.f32.mrb[13].mxu0 }
 0x145   :  { %v3087_v43 = vpop.f32.mrb[14].mxu0 }
 0x146   :  { %v327_v44 = vpack.c.bf16 %v3087_v43, %v3086_v41  ;;  %v308_v45 = vpop.f32.mrb[15].mxu0  ;;  %3099 = vmatpush3.bf16.msra.mxu1 %v325_v38 }
 0x147   :  { %v326_v46 = vpack.c.bf16 %v308_v45, %v305_v42 }
 0x149   :  { %3100 = vmatprep.subr.bf16.mxu1 %v326_v46 }
 0x14a   :  { %3101 = vmatpush3.bf16.msra.mxu1 %v326_v46 }
 0x14b   :  { %3102 = vmatprep.subr.bf16.mxu1 %v327_v44 }
 0x14e   :  { %3103 = vmatpush3.bf16.msra.mxu1 %v327_v44 }
 0x151   :  { %3105 = vmatmul.mubr.bf16.vlgmr.msra.gmra.mrb[0].mxu1 %v3877_v47 }
 0x152   :  { %3108 = vmatprep.mubr.bf16.mxu1 %v3879_v48 }
 0x159   :  { %3109 = vmatmul.mubr.bf16.gmra.mrb[4].mxu1 %v3883_v49 }
 0x15a   :  { %3112 = vmatprep.mubr.bf16.mxu1 %v3885_v50 }
 0x161   :  { %3113 = vmatmul.mubr.bf16.gmra.mrb[8].mxu1 %v3889_v51 }
 0x162   :  { %3116 = vmatprep.mubr.bf16.mxu1 %v3891_v52 }
 0x169   :  { %3117 = vmatmul.mubr.bf16.gmra.mrb[12].mxu1 %v3895_v53 }
 0x16a   :  { %3168 = vmatprep.mubr.bf16.mxu1 %v3874_v16 }
 0x224   :  { %v3106_v57 = vpop.f32.mrb[0].mxu1 }
 0x225   :  { %v424_v58 = vadd.f32 %v3106_v57, %v2728_v56  ;;  %v415_v59 = vpop.f32.mrb[1].mxu1 }
 0x226   :  { %v416_v60 = vadd.f32 %v2728_v56, %v415_v59  ;;  %v3107_v61 = vpop.f32.mrb[2].mxu1  ;;  %v3610_v59 = vld [vmem:[#allocation8 + $0x88] sm:$0xff]  }
 0x227   :  { %v427_v62 = vadd.f32 %v3107_v61, %v2728_v56  ;;  %v418_v63 = vpop.f32.mrb[3].mxu1  ;;  %v480_v1 = vmax.f32 %v424_v58, 0.0  ;;  %v3609_v58 = vld [vmem:[#allocation8 + $0x80] sm:$0xff]   ;;  %v3612_v61 = vld [vmem:[#allocation8 + $0x98] sm:$0xff]  }
 0x228   :  { %v419_v0 = vadd.f32 %v2728_v56, %v418_v63  ;;  %v478_v3 = vmax.f32 %v416_v60, 0.0  ;;  %3184 = vmatprep.subr.bf16.mxu0 %v3609_v58  ;;  %v3611_v60 = vld [vmem:[#allocation8 + $0x90] sm:$0xff]  }
 0x229   :  { %v481_v2 = vmax.f32 %v427_v62, 0.0  ;;  %v3614_v62 = vld [vmem:[#allocation8 + $0xa8] sm:$0xff]  }
 0x22a   :  { %v479_v4 = vmax.f32 %v419_v0, 0.0 }
 0x22b   :  { %v495_v5 = vpack.c.bf16 %v481_v2, %v480_v1 }
 0x22c   :  { %v494_v6 = vpack.c.bf16 %v479_v4, %v478_v3  ;;  %v3110_v7 = vpop.f32.mrb[4].mxu1 }
 0x22d   :  { %v440_v8 = vadd.f32 %v3110_v7, %v2728_v56  ;;  %v431_v9 = vpop.f32.mrb[5].mxu1 }
 0x22e   :  { %v432_v10 = vadd.f32 %v2728_v56, %v431_v9  ;;  %v3111_v11 = vpop.f32.mrb[6].mxu1  ;;  %3136 = vmatprep.mubr.bf16.mxu0 %v494_v6 }
 0x22f   :  { %v443_v12 = vadd.f32 %v3111_v11, %v2728_v56  ;;  %v434_v13 = vpop.f32.mrb[7].mxu1  ;;  %3137 = vmatmul.mubr.bf16.vlgmr.msra.gmra.mrb[16].mxu0 %v495_v5  ;;  %v484_v15 = vmax.f32 %v440_v8, 0.0 }
 0x230   :  { %v435_v14 = vadd.f32 %v2728_v56, %v434_v13  ;;  %v482_v18 = vmax.f32 %v432_v10, 0.0  ;;  %3185 = vmatpush3.bf16.msra.mxu0 %v3609_v58 }
 0x231   :  { %v485_v17 = vmax.f32 %v443_v12, 0.0  ;;  %3186 = vmatprep.subr.bf16.mxu0 %v3610_v59 }
 0x232   :  { %v483_v19 = vmax.f32 %v435_v14, 0.0 }
 0x233   :  { %v497_v20 = vpack.c.bf16 %v485_v17, %v484_v15 }
 0x234   :  { %v496_v21 = vpack.c.bf16 %v483_v19, %v482_v18  ;;  %v3114_v22 = vpop.f32.mrb[8].mxu1  ;;  %3187 = vmatpush3.bf16.msra.mxu0 %v3610_v59 }
 0x235   :  { %v456_v23 = vadd.f32 %v3114_v22, %v2728_v56  ;;  %v447_v24 = vpop.f32.mrb[9].mxu1  ;;  %3188 = vmatprep.subr.bf16.mxu0 %v3611_v60 }
 0x236   :  { %v448_v25 = vadd.f32 %v2728_v56, %v447_v24  ;;  %v3115_v26 = vpop.f32.mrb[10].mxu1  ;;  %3140 = vmatprep.mubr.bf16.mxu0 %v496_v21  ;;  %v3615_v24 = vld [vmem:[#allocation8 + $0xb0] sm:$0xff]  }
 0x237   :  { %v459_v27 = vadd.f32 %v3115_v26, %v2728_v56  ;;  %v450_v28 = vpop.f32.mrb[11].mxu1  ;;  %3141 = vmatmul.mubr.bf16.gmra.mrb[20].mxu0 %v497_v20  ;;  %v488_v30 = vmax.f32 %v456_v23, 0.0  ;;  %v2745_v26 = vld [vmem:[%s4027_s3 + $0x1] ss:$0 sm:$0xff] }
 0x238   :  { %v451_v29 = vadd.f32 %v2728_v56, %v450_v28  ;;  %v486_v32 = vmax.f32 %v448_v25, 0.0  ;;  %3189 = vmatpush3.bf16.msra.mxu0 %v3611_v60  ;;  %v3616_v25 = vld [vmem:[#allocation8 + $0xb8] sm:$0xff]  }
 0x239   :  { %v489_v31 = vmax.f32 %v459_v27, 0.0  ;;  %3190 = vmatprep.subr.bf16.mxu0 %v3612_v61 }
 0x23a   :  { %v487_v33 = vmax.f32 %v451_v29, 0.0 }
 0x23b   :  { %v499_v34 = vpack.c.bf16 %v489_v31, %v488_v30 }
 0x23c   :  { %v498_v35 = vpack.c.bf16 %v487_v33, %v486_v32  ;;  %v3118_v36 = vpop.f32.mrb[12].mxu1  ;;  %3191 = vmatpush3.bf16.msra.mxu0 %v3612_v61 }
 0x23d   :  { %v472_v37 = vadd.f32 %v3118_v36, %v2728_v56  ;;  %v463_v38 = vpop.f32.mrb[13].mxu1 }
 0x23e   :  { %v464_v39 = vadd.f32 %v2728_v56, %v463_v38  ;;  %v3119_v40 = vpop.f32.mrb[14].mxu1  ;;  %3144 = vmatprep.mubr.bf16.mxu0 %v498_v35 }
 0x23f   :  { %v475_v41 = vadd.f32 %v3119_v40, %v2728_v56  ;;  %v466_v42 = vpop.f32.mrb[15].mxu1  ;;  %3145 = vmatmul.mubr.bf16.gmra.mrb[24].mxu0 %v499_v34  ;;  %v492_v44 = vmax.f32 %v472_v37, 0.0 }
 0x240   :  { %v467_v43 = vadd.f32 %v2728_v56, %v466_v42  ;;  %v490_v46 = vmax.f32 %v464_v39, 0.0  ;;  %v3613_v56 = vld [vmem:[#allocation8 + $0xa0] sm:$0xff]  }
 0x241   :  { %v493_v45 = vmax.f32 %v475_v41, 0.0  ;;  %3192 = vmatprep.subr.bf16.mxu0 %v3613_v56 }
 0x242   :  { %v491_v54 = vmax.f32 %v467_v43, 0.0  ;;  %3193 = vmatpush3.bf16.msra.mxu0 %v3613_v56 }
 0x243   :  { %v501_v55 = vpack.c.bf16 %v493_v45, %v492_v44  ;;  %3194 = vmatprep.subr.bf16.mxu0 %v3614_v62 }
 0x244   :  { %v500_v57 = vpack.c.bf16 %v491_v54, %v490_v46 }
 0x246   :  { %3148 = vmatprep.mubr.bf16.mxu0 %v500_v57  ;;  %3195 = vmatpush3.bf16.msra.mxu0 %v3614_v62 }
 0x247   :  { %3149 = vmatmul.mubr.bf16.gmra.mrb[28].mxu0 %v501_v55  ;;  %3196 = vmatprep.subr.bf16.mxu0 %v3615_v24 }
 0x24a   :  { %3197 = vmatpush3.bf16.msra.mxu0 %v3615_v24 }
 0x24b   :  { %3198 = vmatprep.subr.bf16.mxu0 %v3616_v25 }
 0x24e   :  { %3199 = vmatpush3.bf16.msra.mxu0 %v3616_v25 }
 0x302   :  { %v3138_v63 = vpop.f32.mrb[16].mxu0 }
 0x303   :  { %v617_v0 = vpop.f32.mrb[17].mxu0 }
 0x304   :  { %v3139_v1 = vpop.f32.mrb[18].mxu0 }
 0x305   :  { %v681_v2 = vpack.c.bf16 %v3139_v1, %v3138_v63  ;;  %v620_v3 = vpop.f32.mrb[19].mxu0 }
 0x306   :  { %v680_v4 = vpack.c.bf16 %v620_v3, %v617_v0 }
 0x308   :  { %3152 = vmatprep.subr.bf16.mxu1 %v680_v4 }
 0x309   :  { %3153 = vmatpush3.bf16.msra.mxu1 %v680_v4 }
 0x30a   :  { %v3142_v5 = vpop.f32.mrb[20].mxu0  ;;  %3154 = vmatprep.subr.bf16.mxu1 %v681_v2 }
 0x30b   :  { %v633_v6 = vpop.f32.mrb[21].mxu0 }
 0x30c   :  { %v3143_v7 = vpop.f32.mrb[22].mxu0 }
 0x30d   :  { %v683_v8 = vpack.c.bf16 %v3143_v7, %v3142_v5  ;;  %v636_v9 = vpop.f32.mrb[23].mxu0  ;;  %3155 = vmatpush3.bf16.msra.mxu1 %v681_v2 }
 0x30e   :  { %v682_v10 = vpack.c.bf16 %v636_v9, %v633_v6 }
 0x310   :  { %3156 = vmatprep.subr.bf16.mxu1 %v682_v10 }
 0x311   :  { %3157 = vmatpush3.bf16.msra.mxu1 %v682_v10 }
 0x312   :  { %v3146_v11 = vpop.f32.mrb[24].mxu0  ;;  %3158 = vmatprep.subr.bf16.mxu1 %v683_v8 }
 0x313   :  { %v649_v12 = vpop.f32.mrb[25].mxu0 }
 0x314   :  { %v3147_v13 = vpop.f32.mrb[26].mxu0 }
 0x315   :  { %v685_v14 = vpack.c.bf16 %v3147_v13, %v3146_v11  ;;  %v652_v15 = vpop.f32.mrb[27].mxu0  ;;  %3159 = vmatpush3.bf16.msra.mxu1 %v683_v8 }
 0x316   :  { %v684_v17 = vpack.c.bf16 %v652_v15, %v649_v12 }
 0x318   :  { %3160 = vmatprep.subr.bf16.mxu1 %v684_v17 }
 0x319   :  { %3161 = vmatpush3.bf16.msra.mxu1 %v684_v17 }
 0x31a   :  { %v3150_v18 = vpop.f32.mrb[28].mxu0  ;;  %3162 = vmatprep.subr.bf16.mxu1 %v685_v14 }
 0x31b   :  { %v665_v19 = vpop.f32.mrb[29].mxu0 }
 0x31c   :  { %v3151_v20 = vpop.f32.mrb[30].mxu0 }
 0x31d   :  { %v687_v21 = vpack.c.bf16 %v3151_v20, %v3150_v18  ;;  %v668_v22 = vpop.f32.mrb[31].mxu0  ;;  %3163 = vmatpush3.bf16.msra.mxu1 %v685_v14 }
 0x31e   :  { %v686_v23 = vpack.c.bf16 %v668_v22, %v665_v19 }
 0x320   :  { %3164 = vmatprep.subr.bf16.mxu1 %v686_v23 }
 0x321   :  { %3165 = vmatpush3.bf16.msra.mxu1 %v686_v23 }
 0x322   :  { %3166 = vmatprep.subr.bf16.mxu1 %v687_v21 }
 0x325   :  { %3167 = vmatpush3.bf16.msra.mxu1 %v687_v21 }
 0x328   :  { %3169 = vmatmul.mubr.bf16.vlgmr.msra.gmra.mrb[16].mxu1 %v3877_v47 }
 0x329   :  { %3172 = vmatprep.mubr.bf16.mxu1 %v3879_v48 }
 0x330   :  { %3173 = vmatmul.mubr.bf16.gmra.mrb[20].mxu1 %v3883_v49 }
 0x331   :  { %3176 = vmatprep.mubr.bf16.mxu1 %v3885_v50 }
 0x338   :  { %3177 = vmatmul.mubr.bf16.gmra.mrb[24].mxu1 %v3889_v51 }
 0x339   :  { %3180 = vmatprep.mubr.bf16.mxu1 %v3891_v52 }
 0x340   :  { %3181 = vmatmul.mubr.bf16.gmra.mrb[28].mxu1 %v3895_v53 }
 0x341   :  { %3232 = vmatprep.mubr.bf16.mxu1 %v3874_v16 }
 0x3fb   :  { %v3170_v27 = vpop.f32.mrb[16].mxu1 }
 0x3fc   :  { %v736_v28 = vadd.f32 %v3170_v27, %v2745_v26  ;;  %v727_v29 = vpop.f32.mrb[17].mxu1 }
 0x3fd   :  { %v728_v30 = vadd.f32 %v2745_v26, %v727_v29  ;;  %v3171_v31 = vpop.f32.mrb[18].mxu1  ;;  %v3618_v29 = vld [vmem:[#allocation8 + $0xc8] sm:$0xff]  }
 0x3fe   :  { %v739_v32 = vadd.f32 %v3171_v31, %v2745_v26  ;;  %v730_v33 = vpop.f32.mrb[19].mxu1  ;;  %v792_v35 = vmax.f32 %v736_v28, 0.0  ;;  %v3617_v28 = vld [vmem:[#allocation8 + $0xc0] sm:$0xff]   ;;  %v3620_v31 = vld [vmem:[#allocation8 + $0xd8] sm:$0xff]  }
 0x3ff   :  { %v731_v34 = vadd.f32 %v2745_v26, %v730_v33  ;;  %v790_v37 = vmax.f32 %v728_v30, 0.0  ;;  %3248 = vmatprep.subr.bf16.mxu0 %v3617_v28  ;;  %v3619_v30 = vld [vmem:[#allocation8 + $0xd0] sm:$0xff]  }
 0x400   :  { %v793_v36 = vmax.f32 %v739_v32, 0.0  ;;  %v3622_v32 = vld [vmem:[#allocation8 + $0xe8] sm:$0xff]  }
 0x401   :  { %v791_v38 = vmax.f32 %v731_v34, 0.0 }
 0x402   :  { %v807_v39 = vpack.c.bf16 %v793_v36, %v792_v35 }
 0x403   :  { %v806_v40 = vpack.c.bf16 %v791_v38, %v790_v37  ;;  %v3174_v41 = vpop.f32.mrb[20].mxu1 }
 0x404   :  { %v752_v42 = vadd.f32 %v3174_v41, %v2745_v26  ;;  %v743_v43 = vpop.f32.mrb[21].mxu1 }
 0x405   :  { %v744_v44 = vadd.f32 %v2745_v26, %v743_v43  ;;  %v3175_v45 = vpop.f32.mrb[22].mxu1  ;;  %3200 = vmatprep.mubr.bf16.mxu0 %v806_v40 }
 0x406   :  { %v755_v46 = vadd.f32 %v3175_v45, %v2745_v26  ;;  %v746_v54 = vpop.f32.mrb[23].mxu1  ;;  %3201 = vmatmul.mubr.bf16.vlgmr.msra.gmra.mrb[32].mxu0 %v807_v39  ;;  %v796_v57 = vmax.f32 %v752_v42, 0.0 }
 0x407   :  { %v747_v55 = vadd.f32 %v2745_v26, %v746_v54  ;;  %v794_v59 = vmax.f32 %v744_v44, 0.0  ;;  %3249 = vmatpush3.bf16.msra.mxu0 %v3617_v28 }
 0x408   :  { %v797_v58 = vmax.f32 %v755_v46, 0.0  ;;  %3250 = vmatprep.subr.bf16.mxu0 %v3618_v29 }
 0x409   :  { %v795_v60 = vmax.f32 %v747_v55, 0.0 }
 0x40a   :  { %v809_v61 = vpack.c.bf16 %v797_v58, %v796_v57 }
 0x40b   :  { %v808_v56 = vpack.c.bf16 %v795_v60, %v794_v59  ;;  %v3178_v62 = vpop.f32.mrb[24].mxu1  ;;  %3251 = vmatpush3.bf16.msra.mxu0 %v3618_v29 }
 0x40c   :  { %v768_v63 = vadd.f32 %v3178_v62, %v2745_v26  ;;  %v759_v0 = vpop.f32.mrb[25].mxu1  ;;  %3252 = vmatprep.subr.bf16.mxu0 %v3619_v30 }
 0x40d   :  { %v760_v1 = vadd.f32 %v2745_v26, %v759_v0  ;;  %v3179_v2 = vpop.f32.mrb[26].mxu1  ;;  %3204 = vmatprep.mubr.bf16.mxu0 %v808_v56  ;;  %v3623_v0 = vld [vmem:[#allocation8 + $0xf0] sm:$0xff]  }
 0x40e   :  { %v771_v3 = vadd.f32 %v3179_v2, %v2745_v26  ;;  %v762_v4 = vpop.f32.mrb[27].mxu1  ;;  %3205 = vmatmul.mubr.bf16.gmra.mrb[36].mxu0 %v809_v61  ;;  %v800_v6 = vmax.f32 %v768_v63, 0.0  ;;  %v2754_v2 = vld [vmem:[%s4027_s3 + $0x2] ss:$0 sm:$0xff] }
 0x40f   :  { %v763_v5 = vadd.f32 %v2745_v26, %v762_v4  ;;  %v798_v8 = vmax.f32 %v760_v1, 0.0  ;;  %3253 = vmatpush3.bf16.msra.mxu0 %v3619_v30  ;;  %v3624_v1 = vld [vmem:[#allocation8 + $0xf8] sm:$0xff]  }
 0x410   :  { %v801_v7 = vmax.f32 %v771_v3, 0.0  ;;  %3254 = vmatprep.subr.bf16.mxu0 %v3620_v31 }
 0x411   :  { %v799_v9 = vmax.f32 %v763_v5, 0.0 }
 0x412   :  { %v811_v10 = vpack.c.bf16 %v801_v7, %v800_v6 }
 0x413   :  { %v810_v11 = vpack.c.bf16 %v799_v9, %v798_v8  ;;  %v3182_v12 = vpop.f32.mrb[28].mxu1  ;;  %3255 = vmatpush3.bf16.msra.mxu0 %v3620_v31 }
 0x414   :  { %v784_v13 = vadd.f32 %v3182_v12, %v2745_v26  ;;  %v775_v14 = vpop.f32.mrb[29].mxu1 }
 0x415   :  { %v776_v15 = vadd.f32 %v2745_v26, %v775_v14  ;;  %v3183_v17 = vpop.f32.mrb[30].mxu1  ;;  %3208 = vmatprep.mubr.bf16.mxu0 %v810_v11 }
 0x416   :  { %v787_v18 = vadd.f32 %v3183_v17, %v2745_v26  ;;  %v778_v19 = vpop.f32.mrb[31].mxu1  ;;  %3209 = vmatmul.mubr.bf16.gmra.mrb[40].mxu0 %v811_v10  ;;  %v804_v21 = vmax.f32 %v784_v13, 0.0 }
 0x417   :  { %v779_v20 = vadd.f32 %v2745_v26, %v778_v19  ;;  %v802_v23 = vmax.f32 %v776_v15, 0.0  ;;  %v3621_v26 = vld [vmem:[#allocation8 + $0xe0] sm:$0xff]  }
 0x418   :  { %v805_v22 = vmax.f32 %v787_v18, 0.0  ;;  %3256 = vmatprep.subr.bf16.mxu0 %v3621_v26 }
 0x419   :  { %v803_v24 = vmax.f32 %v779_v20, 0.0  ;;  %3257 = vmatpush3.bf16.msra.mxu0 %v3621_v26 }
 0x41a   :  { %v813_v25 = vpack.c.bf16 %v805_v22, %v804_v21  ;;  %3258 = vmatprep.subr.bf16.mxu0 %v3622_v32 }
 0x41b   :  { %v812_v27 = vpack.c.bf16 %v803_v24, %v802_v23 }
 0x41d   :  { %3212 = vmatprep.mubr.bf16.mxu0 %v812_v27  ;;  %3259 = vmatpush3.bf16.msra.mxu0 %v3622_v32 }
 0x41e   :  { %3213 = vmatmul.mubr.bf16.gmra.mrb[44].mxu0 %v813_v25  ;;  %3260 = vmatprep.subr.bf16.mxu0 %v3623_v0 }
 0x421   :  { %3261 = vmatpush3.bf16.msra.mxu0 %v3623_v0 }
 0x422   :  { %3262 = vmatprep.subr.bf16.mxu0 %v3624_v1 }
 0x425   :  { %3263 = vmatpush3.bf16.msra.mxu0 %v3624_v1 }
 0x4d9   :  { %v3202_v33 = vpop.f32.mrb[32].mxu0 }
 0x4da   :  { %v929_v34 = vpop.f32.mrb[33].mxu0 }
 0x4db   :  { %v3203_v35 = vpop.f32.mrb[34].mxu0 }
 0x4dc   :  { %v993_v36 = vpack.c.bf16 %v3203_v35, %v3202_v33  ;;  %v932_v37 = vpop.f32.mrb[35].mxu0 }
 0x4dd   :  { %v992_v38 = vpack.c.bf16 %v932_v37, %v929_v34 }
 0x4df   :  { %3216 = vmatprep.subr.bf16.mxu1 %v992_v38 }
 0x4e0   :  { %3217 = vmatpush3.bf16.msra.mxu1 %v992_v38 }
 0x4e1   :  { %v3206_v39 = vpop.f32.mrb[36].mxu0  ;;  %3218 = vmatprep.subr.bf16.mxu1 %v993_v36 }
 0x4e2   :  { %v945_v40 = vpop.f32.mrb[37].mxu0 }
 0x4e3   :  { %v3207_v41 = vpop.f32.mrb[38].mxu0 }
 0x4e4   :  { %v995_v42 = vpack.c.bf16 %v3207_v41, %v3206_v39  ;;  %v948_v43 = vpop.f32.mrb[39].mxu0  ;;  %3219 = vmatpush3.bf16.msra.mxu1 %v993_v36 }
 0x4e5   :  { %v994_v44 = vpack.c.bf16 %v948_v43, %v945_v40 }
 0x4e7   :  { %3220 = vmatprep.subr.bf16.mxu1 %v994_v44 }
 0x4e8   :  { %3221 = vmatpush3.bf16.msra.mxu1 %v994_v44 }
 0x4e9   :  { %v3210_v45 = vpop.f32.mrb[40].mxu0  ;;  %3222 = vmatprep.subr.bf16.mxu1 %v995_v42 }
 0x4ea   :  { %v961_v46 = vpop.f32.mrb[41].mxu0 }
 0x4eb   :  { %v3211_v54 = vpop.f32.mrb[42].mxu0 }
 0x4ec   :  { %v997_v55 = vpack.c.bf16 %v3211_v54, %v3210_v45  ;;  %v964_v57 = vpop.f32.mrb[43].mxu0  ;;  %3223 = vmatpush3.bf16.msra.mxu1 %v995_v42 }
 0x4ed   :  { %v996_v58 = vpack.c.bf16 %v964_v57, %v961_v46 }
 0x4ef   :  { %3224 = vmatprep.subr.bf16.mxu1 %v996_v58 }
 0x4f0   :  { %3225 = vmatpush3.bf16.msra.mxu1 %v996_v58 }
 0x4f1   :  { %v3214_v59 = vpop.f32.mrb[44].mxu0  ;;  %3226 = vmatprep.subr.bf16.mxu1 %v997_v55 }
 0x4f2   :  { %v977_v60 = vpop.f32.mrb[45].mxu0 }
 0x4f3   :  { %v3215_v61 = vpop.f32.mrb[46].mxu0 }
 0x4f4   :  { %v999_v56 = vpack.c.bf16 %v3215_v61, %v3214_v59  ;;  %v980_v62 = vpop.f32.mrb[47].mxu0  ;;  %3227 = vmatpush3.bf16.msra.mxu1 %v997_v55 }
 0x4f5   :  { %v998_v63 = vpack.c.bf16 %v980_v62, %v977_v60 }
 0x4f7   :  { %3228 = vmatprep.subr.bf16.mxu1 %v998_v63 }
 0x4f8   :  { %3229 = vmatpush3.bf16.msra.mxu1 %v998_v63 }
 0x4f9   :  { %3230 = vmatprep.subr.bf16.mxu1 %v999_v56 }
 0x4fc   :  { %3231 = vmatpush3.bf16.msra.mxu1 %v999_v56 }
 0x4ff   :  { %3233 = vmatmul.mubr.bf16.vlgmr.msra.gmra.mrb[32].mxu1 %v3877_v47 }
 0x500   :  { %3236 = vmatprep.mubr.bf16.mxu1 %v3879_v48 }
 0x507   :  { %3237 = vmatmul.mubr.bf16.gmra.mrb[36].mxu1 %v3883_v49 }
 0x508   :  { %3240 = vmatprep.mubr.bf16.mxu1 %v3885_v50 }
 0x50f   :  { %3241 = vmatmul.mubr.bf16.gmra.mrb[40].mxu1 %v3889_v51 }
 0x510   :  { %3244 = vmatprep.mubr.bf16.mxu1 %v3891_v52 }
 0x517   :  { %3245 = vmatmul.mubr.bf16.gmra.mrb[44].mxu1 %v3895_v53 }
 0x518   :  { %3296 = vmatprep.mubr.bf16.mxu1 %v3874_v16 }
 0x5d2   :  { %v3234_v3 = vpop.f32.mrb[32].mxu1 }
 0x5d3   :  { %v1048_v4 = vadd.f32 %v3234_v3, %v2754_v2  ;;  %v1039_v5 = vpop.f32.mrb[33].mxu1 }
 0x5d4   :  { %v1040_v6 = vadd.f32 %v2754_v2, %v1039_v5  ;;  %v3235_v7 = vpop.f32.mrb[34].mxu1  ;;  %v3626_v5 = vld [vmem:[#allocation8 + $0x108] sm:$0xff]  }
 0x5d5   :  { %v1051_v8 = vadd.f32 %v3235_v7, %v2754_v2  ;;  %v1042_v9 = vpop.f32.mrb[35].mxu1  ;;  %v1104_v11 = vmax.f32 %v1048_v4, 0.0  ;;  %v3625_v4 = vld [vmem:[#allocation8 + $0x100] sm:$0xff]   ;;  %v3628_v7 = vld [vmem:[#allocation8 + $0x118] sm:$0xff]  }
 0x5d6   :  { %v1043_v10 = vadd.f32 %v2754_v2, %v1042_v9  ;;  %v1102_v13 = vmax.f32 %v1040_v6, 0.0  ;;  %3312 = vmatprep.subr.bf16.mxu0 %v3625_v4  ;;  %v3627_v6 = vld [vmem:[#allocation8 + $0x110] sm:$0xff]  }
 0x5d7   :  { %v1105_v12 = vmax.f32 %v1051_v8, 0.0  ;;  %v3630_v8 = vld [vmem:[#allocation8 + $0x128] sm:$0xff]  }
 0x5d8   :  { %v1103_v14 = vmax.f32 %v1043_v10, 0.0 }
 0x5d9   :  { %v1119_v15 = vpack.c.bf16 %v1105_v12, %v1104_v11 }
 0x5da   :  { %v1118_v17 = vpack.c.bf16 %v1103_v14, %v1102_v13  ;;  %v3238_v18 = vpop.f32.mrb[36].mxu1 }
 0x5db   :  { %v1064_v19 = vadd.f32 %v3238_v18, %v2754_v2  ;;  %v1055_v20 = vpop.f32.mrb[37].mxu1 }
 0x5dc   :  { %v1056_v21 = vadd.f32 %v2754_v2, %v1055_v20  ;;  %v3239_v22 = vpop.f32.mrb[38].mxu1  ;;  %3264 = vmatprep.mubr.bf16.mxu0 %v1118_v17 }
 0x5dd   :  { %v1067_v23 = vadd.f32 %v3239_v22, %v2754_v2  ;;  %v1058_v24 = vpop.f32.mrb[39].mxu1  ;;  %3265 = vmatmul.mubr.bf16.vlgmr.msra.gmra.mrb[48].mxu0 %v1119_v15  ;;  %v1108_v27 = vmax.f32 %v1064_v19, 0.0 }
 0x5de   :  { %v1059_v25 = vadd.f32 %v2754_v2, %v1058_v24  ;;  %v1106_v29 = vmax.f32 %v1056_v21, 0.0  ;;  %3313 = vmatpush3.bf16.msra.mxu0 %v3625_v4 }
 0x5df   :  { %v1109_v28 = vmax.f32 %v1067_v23, 0.0  ;;  %3314 = vmatprep.subr.bf16.mxu0 %v3626_v5 }
 0x5e0   :  { %v1107_v30 = vmax.f32 %v1059_v25, 0.0 }
 0x5e1   :  { %v1121_v31 = vpack.c.bf16 %v1109_v28, %v1108_v27 }
 0x5e2   :  { %v1120_v26 = vpack.c.bf16 %v1107_v30, %v1106_v29  ;;  %v3242_v32 = vpop.f32.mrb[40].mxu1  ;;  %3315 = vmatpush3.bf16.msra.mxu0 %v3626_v5 }
 0x5e3   :  { %v1080_v33 = vadd.f32 %v3242_v32, %v2754_v2  ;;  %v1071_v34 = vpop.f32.mrb[41].mxu1  ;;  %3316 = vmatprep.subr.bf16.mxu0 %v3627_v6 }
 0x5e4   :  { %v1072_v35 = vadd.f32 %v2754_v2, %v1071_v34  ;;  %v3243_v36 = vpop.f32.mrb[42].mxu1  ;;  %3268 = vmatprep.mubr.bf16.mxu0 %v1120_v26  ;;  %v3631_v34 = vld [vmem:[#allocation8 + $0x130] sm:$0xff]  }
 0x5e5   :  { %v1083_v37 = vadd.f32 %v3243_v36, %v2754_v2  ;;  %v1074_v38 = vpop.f32.mrb[43].mxu1  ;;  %3269 = vmatmul.mubr.bf16.gmra.mrb[52].mxu0 %v1121_v31  ;;  %v1112_v40 = vmax.f32 %v1080_v33, 0.0 }
 0x5e6   :  { %v1075_v39 = vadd.f32 %v2754_v2, %v1074_v38  ;;  %v1110_v42 = vmax.f32 %v1072_v35, 0.0  ;;  %3317 = vmatpush3.bf16.msra.mxu0 %v3627_v6  ;;  %v3632_v35 = vld [vmem:[#allocation8 + $0x138] sm:$0xff]  }
 0x5e7   :  { %v1113_v41 = vmax.f32 %v1083_v37, 0.0  ;;  %3318 = vmatprep.subr.bf16.mxu0 %v3628_v7 }
 0x5e8   :  { %v1111_v43 = vmax.f32 %v1075_v39, 0.0 }
 0x5e9   :  { %v1123_v44 = vpack.c.bf16 %v1113_v41, %v1112_v40 }
 0x5ea   :  { %v1122_v45 = vpack.c.bf16 %v1111_v43, %v1110_v42  ;;  %v3246_v46 = vpop.f32.mrb[44].mxu1  ;;  %3319 = vmatpush3.bf16.msra.mxu0 %v3628_v7 }
 0x5eb   :  { %v1096_v54 = vadd.f32 %v3246_v46, %v2754_v2  ;;  %v1087_v55 = vpop.f32.mrb[45].mxu1 }
 0x5ec   :  { %v1088_v57 = vadd.f32 %v2754_v2, %v1087_v55  ;;  %v3247_v58 = vpop.f32.mrb[46].mxu1  ;;  %3272 = vmatprep.mubr.bf16.mxu0 %v1122_v45 }
 0x5ed   :  { %v1099_v59 = vadd.f32 %v3247_v58, %v2754_v2  ;;  %v1090_v60 = vpop.f32.mrb[47].mxu1  ;;  %3273 = vmatmul.mubr.bf16.gmra.mrb[56].mxu0 %v1123_v44  ;;  %v1116_v56 = vmax.f32 %v1096_v54, 0.0 }
 0x5ee   :  { %v1091_v61 = vadd.f32 %v2754_v2, %v1090_v60  ;;  %v1114_v63 = vmax.f32 %v1088_v57, 0.0  ;;  %v3629_v2 = vld [vmem:[#allocation8 + $0x120] sm:$0xff]  }
 0x5ef   :  { %v1117_v62 = vmax.f32 %v1099_v59, 0.0  ;;  %3320 = vmatprep.subr.bf16.mxu0 %v3629_v2 }
 0x5f0   :  { %v1115_v0 = vmax.f32 %v1091_v61, 0.0  ;;  %3321 = vmatpush3.bf16.msra.mxu0 %v3629_v2 }
 0x5f1   :  { %v1125_v1 = vpack.c.bf16 %v1117_v62, %v1116_v56  ;;  %3322 = vmatprep.subr.bf16.mxu0 %v3630_v8 }
 0x5f2   :  { %v1124_v3 = vpack.c.bf16 %v1115_v0, %v1114_v63 }
 0x5f4   :  { %3276 = vmatprep.mubr.bf16.mxu0 %v1124_v3  ;;  %3323 = vmatpush3.bf16.msra.mxu0 %v3630_v8 }
 0x5f5   :  { %3277 = vmatmul.mubr.bf16.gmra.mrb[60].mxu0 %v1125_v1  ;;  %3324 = vmatprep.subr.bf16.mxu0 %v3631_v34 }
 0x5f8   :  { %3325 = vmatpush3.bf16.msra.mxu0 %v3631_v34 }
 0x5f9   :  { %3326 = vmatprep.subr.bf16.mxu0 %v3632_v35 }
 0x5fc   :  { %3327 = vmatpush3.bf16.msra.mxu0 %v3632_v35 }
 0x6b0   :  { %v3266_v9 = vpop.f32.mrb[48].mxu0 }
 0x6b1   :  { %v1241_v10 = vpop.f32.mrb[49].mxu0 }
 0x6b2   :  { %v3267_v11 = vpop.f32.mrb[50].mxu0 }
 0x6b3   :  { %v1305_v12 = vpack.c.bf16 %v3267_v11, %v3266_v9  ;;  %v1244_v13 = vpop.f32.mrb[51].mxu0 }
 0x6b4   :  { %v1304_v14 = vpack.c.bf16 %v1244_v13, %v1241_v10  ;;  %v3634_v13 = vld [vmem:[#allocation8 + $0x148] sm:$0xff]  }
 0x6b6   :  { %3280 = vmatprep.subr.bf16.mxu1 %v1304_v14 }
 0x6b7   :  { %3281 = vmatpush3.bf16.msra.mxu1 %v1304_v14  ;;  %v3635_v14 = vld [vmem:[#allocation8 + $0x150] sm:$0xff]  }
 0x6b8   :  { %v3270_v15 = vpop.f32.mrb[52].mxu0  ;;  %3282 = vmatprep.subr.bf16.mxu1 %v1305_v12 }
 0x6b9   :  { %v1257_v17 = vpop.f32.mrb[53].mxu0 }
 0x6ba   :  { %v3271_v18 = vpop.f32.mrb[54].mxu0 }
 0x6bb   :  { %v1307_v19 = vpack.c.bf16 %v3271_v18, %v3270_v15  ;;  %v1260_v20 = vpop.f32.mrb[55].mxu0  ;;  %3283 = vmatpush3.bf16.msra.mxu1 %v1305_v12  ;;  %v3633_v12 = vld [vmem:[#allocation8 + $0x140] sm:$0xff]   ;;  %v3636_v15 = vld [vmem:[#allocation8 + $0x158] sm:$0xff]   ;;  %v3638_v18 = vld [vmem:[#allocation8 + $0x168] sm:$0xff]  }
 0x6bc   :  { %v1306_v21 = vpack.c.bf16 %v1260_v20, %v1257_v17  ;;  %3376 = vmatprep.subr.bf16.mxu0 %v3633_v12  ;;  %v3637_v17 = vld [vmem:[#allocation8 + $0x160] sm:$0xff]  }
 0x6be   :  { %3284 = vmatprep.subr.bf16.mxu1 %v1306_v21 }
 0x6bf   :  { %3285 = vmatpush3.bf16.msra.mxu1 %v1306_v21 }
 0x6c0   :  { %v3274_v22 = vpop.f32.mrb[56].mxu0  ;;  %3286 = vmatprep.subr.bf16.mxu1 %v1307_v19 }
 0x6c1   :  { %v1273_v23 = vpop.f32.mrb[57].mxu0 }
 0x6c2   :  { %v3275_v24 = vpop.f32.mrb[58].mxu0 }
 0x6c3   :  { %v1309_v25 = vpack.c.bf16 %v3275_v24, %v3274_v22  ;;  %v1276_v27 = vpop.f32.mrb[59].mxu0  ;;  %3287 = vmatpush3.bf16.msra.mxu1 %v1307_v19 }
 0x6c4   :  { %v1308_v28 = vpack.c.bf16 %v1276_v27, %v1273_v23 }
 0x6c6   :  { %3288 = vmatprep.subr.bf16.mxu1 %v1308_v28 }
 0x6c7   :  { %3289 = vmatpush3.bf16.msra.mxu1 %v1308_v28 }
 0x6c8   :  { %v3278_v29 = vpop.f32.mrb[60].mxu0  ;;  %3290 = vmatprep.subr.bf16.mxu1 %v1309_v25 }
 0x6c9   :  { %v1289_v30 = vpop.f32.mrb[61].mxu0 }
 0x6ca   :  { %v3279_v31 = vpop.f32.mrb[62].mxu0 }
 0x6cb   :  { %v1311_v26 = vpack.c.bf16 %v3279_v31, %v3278_v29  ;;  %v1292_v32 = vpop.f32.mrb[63].mxu0  ;;  %3291 = vmatpush3.bf16.msra.mxu1 %v1309_v25 }
 0x6cc   :  { %v1310_v33 = vpack.c.bf16 %v1292_v32, %v1289_v30 }
 0x6ce   :  { %3292 = vmatprep.subr.bf16.mxu1 %v1310_v33 }
 0x6cf   :  { %3293 = vmatpush3.bf16.msra.mxu1 %v1310_v33 }
 0x6d0   :  { %3294 = vmatprep.subr.bf16.mxu1 %v1311_v26 }
 0x6d3   :  { %3295 = vmatpush3.bf16.msra.mxu1 %v1311_v26 }
 0x6d6   :  { %3297 = vmatmul.mubr.bf16.vlgmr.msra.gmra.mrb[48].mxu1 %v3877_v47  ;;  %v2763_v47 = vld [vmem:[%s4027_s3 + $0x3] ss:$0 sm:$0xff] }
 0x6d7   :  { %3300 = vmatprep.mubr.bf16.mxu1 %v3879_v48 }
 0x6de   :  { %3301 = vmatmul.mubr.bf16.gmra.mrb[52].mxu1 %v3883_v49 }
 0x6df   :  { %3304 = vmatprep.mubr.bf16.mxu1 %v3885_v50 }
 0x6e6   :  { %3305 = vmatmul.mubr.bf16.gmra.mrb[56].mxu1 %v3889_v51 }
 0x6e7   :  { %3308 = vmatprep.mubr.bf16.mxu1 %v3891_v52 }
 0x6ee   :  { %3309 = vmatmul.mubr.bf16.gmra.mrb[60].mxu1 %v3895_v53 }
 0x6ef   :  { %3360 = vmatprep.mubr.bf16.mxu1 %v3874_v16 }
 0x7a9   :  { %v3298_v48 = vpop.f32.mrb[48].mxu1 }
 0x7aa   :  { %v1360_v49 = vadd.f32 %v3298_v48, %v2763_v47  ;;  %v1351_v50 = vpop.f32.mrb[49].mxu1 }
 0x7ab   :  { %v1352_v51 = vadd.f32 %v2763_v47, %v1351_v50  ;;  %v3299_v36 = vpop.f32.mrb[50].mxu1 }
 0x7ac   :  { %1416 = vst [vmem:[#allocation9 + $0x10] sm:$0xff] %v1360_v49  ;;  %v1363_v52 = vadd.f32 %v3299_v36, %v2763_v47  ;;  %v1354_v53 = vpop.f32.mrb[51].mxu1 }
 0x7ad   :  { %1414 = vst [vmem:[#allocation9] sm:$0xff] %v1352_v51  ;;  %v1355_v16 = vadd.f32 %v2763_v47, %v1354_v53  ;;  %v3935_v53 = vld [vmem:[#allocation3 + $0x8] sm:$0xff]  }
 0x7ae   :  { %1417 = vst [vmem:[#allocation9 + $0x18] sm:$0xff] %v1363_v52  ;;  %v1431_v37 = vpack.c.bf16 %v1363_v52, %v1360_v49 }
 0x7af   :  { %1415 = vst [vmem:[#allocation9 + $0x8] sm:$0xff] %v1355_v16  ;;  %v1430_v38 = vpack.c.bf16 %v1355_v16, %v1352_v51  ;;  %v3938_v16 = vld [vmem:[#allocation3 + $0x10] sm:$0xff]  }
 0x7b1   :  { %v3302_v39 = vpop.f32.mrb[52].mxu1  ;;  %3328 = vmatprep.mubr.bf16.mxu0 %v1430_v38  ;;  %v3944_v38 = vld [vmem:[#allocation3 + $0x20] sm:$0xff]  }
 0x7b2   :  { %v1376_v40 = vadd.f32 %v3302_v39, %v2763_v47  ;;  %v1367_v41 = vpop.f32.mrb[53].mxu1  ;;  %3329 = vmatmul.mubr.bf16.vlgmr.msra.gmra.mrb[64].mxu0 %v1431_v37  ;;  %v3941_v37 = vld [vmem:[#allocation3 + $0x18] sm:$0xff]   ;;  %v3947_v39 = vld [vmem:[#allocation3 + $0x28] sm:$0xff]  }
 0x7b3   :  { %v1368_v42 = vadd.f32 %v2763_v47, %v1367_v41  ;;  %v3303_v43 = vpop.f32.mrb[54].mxu1  ;;  %3377 = vmatpush3.bf16.msra.mxu0 %v3633_v12  ;;  %v3953_v41 = vld [vmem:[#allocation3 + $0x38] sm:$0xff]  }
 0x7b4   :  { %1420 = vst [vmem:[#allocation9 + $0x30] sm:$0xff] %v1376_v40  ;;  %v1379_v44 = vadd.f32 %v3303_v43, %v2763_v47  ;;  %v1370_v45 = vpop.f32.mrb[55].mxu1  ;;  %3378 = vmatprep.subr.bf16.mxu0 %v3634_v13  ;;  %v3639_v43 = vld [vmem:[#allocation8 + $0x170] sm:$0xff]  }
 0x7b5   :  { %1418 = vst [vmem:[#allocation9 + $0x20] sm:$0xff] %v1368_v42  ;;  %v1371_v46 = vadd.f32 %v2763_v47, %v1370_v45  ;;  %v2772_v45 = vld [vmem:[%s4027_s3 + $0x4] ss:$0 sm:$0xff] }
 0x7b6   :  { %1421 = vst [vmem:[#allocation9 + $0x38] sm:$0xff] %v1379_v44  ;;  %v1433_v54 = vpack.c.bf16 %v1379_v44, %v1376_v40  ;;  %v3950_v40 = vld [vmem:[#allocation3 + $0x30] sm:$0xff]   ;;  %v3640_v44 = vld [vmem:[#allocation8 + $0x178] sm:$0xff]  }
 0x7b7   :  { %1419 = vst [vmem:[#allocation9 + $0x28] sm:$0xff] %v1371_v46  ;;  %v1432_v55 = vpack.c.bf16 %v1371_v46, %v1368_v42  ;;  %3379 = vmatpush3.bf16.msra.mxu0 %v3634_v13  ;;  %v3956_v42 = vld [vmem:[#allocation3] sm:$0xff]  }
 0x7b8   :  { %3380 = vmatprep.subr.bf16.mxu0 %v3635_v14 }
 0x7b9   :  { %v3306_v57 = vpop.f32.mrb[56].mxu1  ;;  %3332 = vmatprep.mubr.bf16.mxu0 %v1432_v55 }
 0x7ba   :  { %v1392_v58 = vadd.f32 %v3306_v57, %v2763_v47  ;;  %v1383_v59 = vpop.f32.mrb[57].mxu1  ;;  %3333 = vmatmul.mubr.bf16.gmra.mrb[68].mxu0 %v1433_v54 }
 0x7bb   :  { %v1384_v60 = vadd.f32 %v2763_v47, %v1383_v59  ;;  %v3307_v61 = vpop.f32.mrb[58].mxu1  ;;  %3381 = vmatpush3.bf16.msra.mxu0 %v3635_v14 }
 0x7bc   :  { %1424 = vst [vmem:[#allocation9 + $0x50] sm:$0xff] %v1392_v58  ;;  %v1395_v56 = vadd.f32 %v3307_v61, %v2763_v47  ;;  %v1386_v62 = vpop.f32.mrb[59].mxu1  ;;  %3382 = vmatprep.subr.bf16.mxu0 %v3636_v15 }
 0x7bd   :  { %1422 = vst [vmem:[#allocation9 + $0x40] sm:$0xff] %v1384_v60  ;;  %v1387_v63 = vadd.f32 %v2763_v47, %v1386_v62 }
 0x7be   :  { %1425 = vst [vmem:[#allocation9 + $0x58] sm:$0xff] %v1395_v56  ;;  %v1435_v0 = vpack.c.bf16 %v1395_v56, %v1392_v58 }
 0x7bf   :  { %1423 = vst [vmem:[#allocation9 + $0x48] sm:$0xff] %v1387_v63  ;;  %v1434_v1 = vpack.c.bf16 %v1387_v63, %v1384_v60  ;;  %3383 = vmatpush3.bf16.msra.mxu0 %v3636_v15 }
 0x7c0   :  { %3384 = vmatprep.subr.bf16.mxu0 %v3637_v17 }
 0x7c1   :  { %v3310_v3 = vpop.f32.mrb[60].mxu1  ;;  %3336 = vmatprep.mubr.bf16.mxu0 %v1434_v1 }
 0x7c2   :  { %v1408_v4 = vadd.f32 %v3310_v3, %v2763_v47  ;;  %v1399_v5 = vpop.f32.mrb[61].mxu1  ;;  %3337 = vmatmul.mubr.bf16.gmra.mrb[72].mxu0 %v1435_v0 }
 0x7c3   :  { %v1400_v6 = vadd.f32 %v2763_v47, %v1399_v5  ;;  %v3311_v7 = vpop.f32.mrb[62].mxu1  ;;  %3385 = vmatpush3.bf16.msra.mxu0 %v3637_v17 }
 0x7c4   :  { %1428 = vst [vmem:[#allocation9 + $0x70] sm:$0xff] %v1408_v4  ;;  %v1411_v2 = vadd.f32 %v3311_v7, %v2763_v47  ;;  %v1402_v8 = vpop.f32.mrb[63].mxu1  ;;  %3386 = vmatprep.subr.bf16.mxu0 %v3638_v18 }
 0x7c5   :  { %1426 = vst [vmem:[#allocation9 + $0x60] sm:$0xff] %v1400_v6  ;;  %v1403_v9 = vadd.f32 %v2763_v47, %v1402_v8 }
 0x7c6   :  { %1429 = vst [vmem:[#allocation9 + $0x78] sm:$0xff] %v1411_v2  ;;  %v1437_v10 = vpack.c.bf16 %v1411_v2, %v1408_v4 }
 0x7c7   :  { %1427 = vst [vmem:[#allocation9 + $0x68] sm:$0xff] %v1403_v9  ;;  %v1436_v11 = vpack.c.bf16 %v1403_v9, %v1400_v6  ;;  %3387 = vmatpush3.bf16.msra.mxu0 %v3638_v18 }
 0x7c8   :  { %3388 = vmatprep.subr.bf16.mxu0 %v3639_v43 }
 0x7c9   :  { %3340 = vmatprep.mubr.bf16.mxu0 %v1436_v11 }
 0x7ca   :  { %3341 = vmatmul.mubr.bf16.gmra.mrb[76].mxu0 %v1437_v10 }
 0x7cb   :  { %3389 = vmatpush3.bf16.msra.mxu0 %v3639_v43 }
 0x7cc   :  { %3390 = vmatprep.subr.bf16.mxu0 %v3640_v44 }
 0x7cf   :  { %3391 = vmatpush3.bf16.msra.mxu0 %v3640_v44 }
 0x885   :  { %v3330_v19 = vpop.f32.mrb[64].mxu0 }
 0x886   :  { %v1553_v20 = vpop.f32.mrb[65].mxu0 }
 0x887   :  { %v3331_v21 = vpop.f32.mrb[66].mxu0 }
 0x888   :  { %v1617_v22 = vpack.c.bf16 %v3331_v21, %v3330_v19  ;;  %v1556_v23 = vpop.f32.mrb[67].mxu0 }
 0x889   :  { %v1616_v24 = vpack.c.bf16 %v1556_v23, %v1553_v20 }
 0x88b   :  { %3344 = vmatprep.subr.bf16.mxu1 %v1616_v24 }
 0x88c   :  { %3345 = vmatpush3.bf16.msra.mxu1 %v1616_v24 }
 0x88d   :  { %v3334_v25 = vpop.f32.mrb[68].mxu0  ;;  %3346 = vmatprep.subr.bf16.mxu1 %v1617_v22 }
 0x88e   :  { %v1569_v27 = vpop.f32.mrb[69].mxu0 }
 0x88f   :  { %v3335_v28 = vpop.f32.mrb[70].mxu0 }
 0x890   :  { %v1619_v29 = vpack.c.bf16 %v3335_v28, %v3334_v25  ;;  %v1572_v30 = vpop.f32.mrb[71].mxu0  ;;  %3347 = vmatpush3.bf16.msra.mxu1 %v1617_v22 }
 0x891   :  { %v1618_v31 = vpack.c.bf16 %v1572_v30, %v1569_v27 }
 0x893   :  { %3348 = vmatprep.subr.bf16.mxu1 %v1618_v31 }
 0x894   :  { %3349 = vmatpush3.bf16.msra.mxu1 %v1618_v31 }
 0x895   :  { %v3338_v26 = vpop.f32.mrb[72].mxu0  ;;  %3350 = vmatprep.subr.bf16.mxu1 %v1619_v29 }
 0x896   :  { %v1585_v32 = vpop.f32.mrb[73].mxu0 }
 0x897   :  { %v3339_v33 = vpop.f32.mrb[74].mxu0 }
 0x898   :  { %v1621_v34 = vpack.c.bf16 %v3339_v33, %v3338_v26  ;;  %v1588_v35 = vpop.f32.mrb[75].mxu0  ;;  %3351 = vmatpush3.bf16.msra.mxu1 %v1619_v29 }
 0x899   :  { %v1620_v47 = vpack.c.bf16 %v1588_v35, %v1585_v32 }
 0x89b   :  { %3352 = vmatprep.subr.bf16.mxu1 %v1620_v47 }
 0x89c   :  { %3353 = vmatpush3.bf16.msra.mxu1 %v1620_v47 }
 0x89d   :  { %v3342_v48 = vpop.f32.mrb[76].mxu0  ;;  %3354 = vmatprep.subr.bf16.mxu1 %v1621_v34 }
 0x89e   :  { %v1601_v49 = vpop.f32.mrb[77].mxu0 }
 0x89f   :  { %v3343_v50 = vpop.f32.mrb[78].mxu0 }
 0x8a0   :  { %v1623_v51 = vpack.c.bf16 %v3343_v50, %v3342_v48  ;;  %v1604_v36 = vpop.f32.mrb[79].mxu0  ;;  %3355 = vmatpush3.bf16.msra.mxu1 %v1621_v34 }
 0x8a1   :  { %v1622_v52 = vpack.c.bf16 %v1604_v36, %v1601_v49 }
 0x8a3   :  { %3356 = vmatprep.subr.bf16.mxu1 %v1622_v52 }
 0x8a4   :  { %3357 = vmatpush3.bf16.msra.mxu1 %v1622_v52 }
 0x8a5   :  { %3358 = vmatprep.subr.bf16.mxu1 %v1623_v51 }
 0x8a8   :  { %3359 = vmatpush3.bf16.msra.mxu1 %v1623_v51 }
 0x8ab   :  { %3361 = vmatmul.mubr.bf16.vlgmr.msra.gmra.mrb[64].mxu1 %v3935_v53 }
 0x8ac   :  { %3364 = vmatprep.mubr.bf16.mxu1 %v3938_v16 }
 0x8b3   :  { %3365 = vmatmul.mubr.bf16.gmra.mrb[68].mxu1 %v3941_v37 }
 0x8b4   :  { %3368 = vmatprep.mubr.bf16.mxu1 %v3944_v38 }
 0x8bb   :  { %3369 = vmatmul.mubr.bf16.gmra.mrb[72].mxu1 %v3947_v39 }
 0x8bc   :  { %3372 = vmatprep.mubr.bf16.mxu1 %v3950_v40 }
 0x8c3   :  { %3373 = vmatmul.mubr.bf16.gmra.mrb[76].mxu1 %v3953_v41 }
 0x8c4   :  { %3424 = vmatprep.mubr.bf16.mxu1 %v3956_v42 }
 0x97e   :  { %v3362_v46 = vpop.f32.mrb[64].mxu1 }
 0x97f   :  { %v1672_v54 = vadd.f32 %v3362_v46, %v2772_v45  ;;  %v1663_v55 = vpop.f32.mrb[65].mxu1 }
 0x980   :  { %v1664_v57 = vadd.f32 %v2772_v45, %v1663_v55  ;;  %v3363_v58 = vpop.f32.mrb[66].mxu1  ;;  %v3642_v55 = vld [vmem:[#allocation8 + $0x188] sm:$0xff]  }
 0x981   :  { %v1675_v59 = vadd.f32 %v3363_v58, %v2772_v45  ;;  %v1666_v60 = vpop.f32.mrb[67].mxu1  ;;  %v1728_v56 = vmax.f32 %v1672_v54, 0.0  ;;  %v3641_v54 = vld [vmem:[#allocation8 + $0x180] sm:$0xff]   ;;  %v3644_v58 = vld [vmem:[#allocation8 + $0x198] sm:$0xff]  }
 0x982   :  { %v1667_v61 = vadd.f32 %v2772_v45, %v1666_v60  ;;  %v1726_v63 = vmax.f32 %v1664_v57, 0.0  ;;  %3440 = vmatprep.subr.bf16.mxu0 %v3641_v54  ;;  %v3643_v57 = vld [vmem:[#allocation8 + $0x190] sm:$0xff]  }
 0x983   :  { %v1729_v62 = vmax.f32 %v1675_v59, 0.0  ;;  %v3646_v59 = vld [vmem:[#allocation8 + $0x1a8] sm:$0xff]  }
 0x984   :  { %v1727_v0 = vmax.f32 %v1667_v61, 0.0 }
 0x985   :  { %v1743_v1 = vpack.c.bf16 %v1729_v62, %v1728_v56 }
 0x986   :  { %v1742_v3 = vpack.c.bf16 %v1727_v0, %v1726_v63  ;;  %v3366_v4 = vpop.f32.mrb[68].mxu1 }
 0x987   :  { %v1688_v5 = vadd.f32 %v3366_v4, %v2772_v45  ;;  %v1679_v6 = vpop.f32.mrb[69].mxu1 }
 0x988   :  { %v1680_v7 = vadd.f32 %v2772_v45, %v1679_v6  ;;  %v3367_v2 = vpop.f32.mrb[70].mxu1  ;;  %3392 = vmatprep.mubr.bf16.mxu0 %v1742_v3 }
 0x989   :  { %v1691_v8 = vadd.f32 %v3367_v2, %v2772_v45  ;;  %v1682_v9 = vpop.f32.mrb[71].mxu1  ;;  %3393 = vmatmul.mubr.bf16.vlgmr.msra.gmra.mrb[80].mxu0 %v1743_v1  ;;  %v1732_v11 = vmax.f32 %v1688_v5, 0.0 }
 0x98a   :  { %v1683_v10 = vadd.f32 %v2772_v45, %v1682_v9  ;;  %v1730_v13 = vmax.f32 %v1680_v7, 0.0  ;;  %3441 = vmatpush3.bf16.msra.mxu0 %v3641_v54 }
 0x98b   :  { %v1733_v12 = vmax.f32 %v1691_v8, 0.0  ;;  %3442 = vmatprep.subr.bf16.mxu0 %v3642_v55 }
 0x98c   :  { %v1731_v14 = vmax.f32 %v1683_v10, 0.0 }
 0x98d   :  { %v1745_v15 = vpack.c.bf16 %v1733_v12, %v1732_v11 }
 0x98e   :  { %v1744_v17 = vpack.c.bf16 %v1731_v14, %v1730_v13  ;;  %v3370_v18 = vpop.f32.mrb[72].mxu1  ;;  %3443 = vmatpush3.bf16.msra.mxu0 %v3642_v55 }
 0x98f   :  { %v1704_v19 = vadd.f32 %v3370_v18, %v2772_v45  ;;  %v1695_v20 = vpop.f32.mrb[73].mxu1  ;;  %3444 = vmatprep.subr.bf16.mxu0 %v3643_v57 }
 0x990   :  { %v1696_v21 = vadd.f32 %v2772_v45, %v1695_v20  ;;  %v3371_v22 = vpop.f32.mrb[74].mxu1  ;;  %3396 = vmatprep.mubr.bf16.mxu0 %v1744_v17  ;;  %v3647_v20 = vld [vmem:[#allocation8 + $0x1b0] sm:$0xff]  }
 0x991   :  { %v1707_v23 = vadd.f32 %v3371_v22, %v2772_v45  ;;  %v1698_v24 = vpop.f32.mrb[75].mxu1  ;;  %3397 = vmatmul.mubr.bf16.gmra.mrb[84].mxu0 %v1745_v15  ;;  %v1736_v27 = vmax.f32 %v1704_v19, 0.0  ;;  %v2781_v22 = vld [vmem:[%s4027_s3 + $0x5] ss:$0 sm:$0xff] }
 0x992   :  { %v1699_v25 = vadd.f32 %v2772_v45, %v1698_v24  ;;  %v1734_v29 = vmax.f32 %v1696_v21, 0.0  ;;  %3445 = vmatpush3.bf16.msra.mxu0 %v3643_v57  ;;  %v3648_v21 = vld [vmem:[#allocation8 + $0x1b8] sm:$0xff]  }
 0x993   :  { %v1737_v28 = vmax.f32 %v1707_v23, 0.0  ;;  %3446 = vmatprep.subr.bf16.mxu0 %v3644_v58 }
 0x994   :  { %v1735_v30 = vmax.f32 %v1699_v25, 0.0 }
 0x995   :  { %v1747_v31 = vpack.c.bf16 %v1737_v28, %v1736_v27 }
 0x996   :  { %v1746_v26 = vpack.c.bf16 %v1735_v30, %v1734_v29  ;;  %v3374_v32 = vpop.f32.mrb[76].mxu1  ;;  %3447 = vmatpush3.bf16.msra.mxu0 %v3644_v58 }
 0x997   :  { %v1720_v33 = vadd.f32 %v3374_v32, %v2772_v45  ;;  %v1711_v34 = vpop.f32.mrb[77].mxu1 }
 0x998   :  { %v1712_v35 = vadd.f32 %v2772_v45, %v1711_v34  ;;  %v3375_v47 = vpop.f32.mrb[78].mxu1  ;;  %3400 = vmatprep.mubr.bf16.mxu0 %v1746_v26 }
 0x999   :  { %v1723_v48 = vadd.f32 %v3375_v47, %v2772_v45  ;;  %v1714_v49 = vpop.f32.mrb[79].mxu1  ;;  %3401 = vmatmul.mubr.bf16.gmra.mrb[88].mxu0 %v1747_v31  ;;  %v1740_v51 = vmax.f32 %v1720_v33, 0.0 }
 0x99a   :  { %v1715_v50 = vadd.f32 %v2772_v45, %v1714_v49  ;;  %v1738_v52 = vmax.f32 %v1712_v35, 0.0  ;;  %v3645_v45 = vld [vmem:[#allocation8 + $0x1a0] sm:$0xff]  }
 0x99b   :  { %v1741_v36 = vmax.f32 %v1723_v48, 0.0  ;;  %3448 = vmatprep.subr.bf16.mxu0 %v3645_v45 }
 0x99c   :  { %v1739_v43 = vmax.f32 %v1715_v50, 0.0  ;;  %3449 = vmatpush3.bf16.msra.mxu0 %v3645_v45 }
 0x99d   :  { %v1749_v44 = vpack.c.bf16 %v1741_v36, %v1740_v51  ;;  %3450 = vmatprep.subr.bf16.mxu0 %v3646_v59 }
 0x99e   :  { %v1748_v46 = vpack.c.bf16 %v1739_v43, %v1738_v52 }
 0x9a0   :  { %3404 = vmatprep.mubr.bf16.mxu0 %v1748_v46  ;;  %3451 = vmatpush3.bf16.msra.mxu0 %v3646_v59 }
 0x9a1   :  { %3405 = vmatmul.mubr.bf16.gmra.mrb[92].mxu0 %v1749_v44  ;;  %3452 = vmatprep.subr.bf16.mxu0 %v3647_v20 }
 0x9a4   :  { %3453 = vmatpush3.bf16.msra.mxu0 %v3647_v20 }
 0x9a5   :  { %3454 = vmatprep.subr.bf16.mxu0 %v3648_v21 }
 0x9a8   :  { %3455 = vmatpush3.bf16.msra.mxu0 %v3648_v21 }
 0xa5c   :  { %v3394_v60 = vpop.f32.mrb[80].mxu0 }
 0xa5d   :  { %v1865_v61 = vpop.f32.mrb[81].mxu0 }
 0xa5e   :  { %v3395_v56 = vpop.f32.mrb[82].mxu0 }
 0xa5f   :  { %v1929_v62 = vpack.c.bf16 %v3395_v56, %v3394_v60  ;;  %v1868_v63 = vpop.f32.mrb[83].mxu0 }
 0xa60   :  { %v1928_v0 = vpack.c.bf16 %v1868_v63, %v1865_v61 }
 0xa62   :  { %3408 = vmatprep.subr.bf16.mxu1 %v1928_v0 }
 0xa63   :  { %3409 = vmatpush3.bf16.msra.mxu1 %v1928_v0 }
 0xa64   :  { %v3398_v1 = vpop.f32.mrb[84].mxu0  ;;  %3410 = vmatprep.subr.bf16.mxu1 %v1929_v62 }
 0xa65   :  { %v1881_v3 = vpop.f32.mrb[85].mxu0 }
 0xa66   :  { %v3399_v4 = vpop.f32.mrb[86].mxu0 }
 0xa67   :  { %v1931_v5 = vpack.c.bf16 %v3399_v4, %v3398_v1  ;;  %v1884_v6 = vpop.f32.mrb[87].mxu0  ;;  %3411 = vmatpush3.bf16.msra.mxu1 %v1929_v62 }
 0xa68   :  { %v1930_v7 = vpack.c.bf16 %v1884_v6, %v1881_v3 }
 0xa6a   :  { %3412 = vmatprep.subr.bf16.mxu1 %v1930_v7 }
 0xa6b   :  { %3413 = vmatpush3.bf16.msra.mxu1 %v1930_v7 }
 0xa6c   :  { %v3402_v2 = vpop.f32.mrb[88].mxu0  ;;  %3414 = vmatprep.subr.bf16.mxu1 %v1931_v5 }
 0xa6d   :  { %v1897_v8 = vpop.f32.mrb[89].mxu0 }
 0xa6e   :  { %v3403_v9 = vpop.f32.mrb[90].mxu0 }
 0xa6f   :  { %v1933_v10 = vpack.c.bf16 %v3403_v9, %v3402_v2  ;;  %v1900_v11 = vpop.f32.mrb[91].mxu0  ;;  %3415 = vmatpush3.bf16.msra.mxu1 %v1931_v5 }
 0xa70   :  { %v1932_v12 = vpack.c.bf16 %v1900_v11, %v1897_v8 }
 0xa72   :  { %3416 = vmatprep.subr.bf16.mxu1 %v1932_v12 }
 0xa73   :  { %3417 = vmatpush3.bf16.msra.mxu1 %v1932_v12 }
 0xa74   :  { %v3406_v13 = vpop.f32.mrb[92].mxu0  ;;  %3418 = vmatprep.subr.bf16.mxu1 %v1933_v10 }
 0xa75   :  { %v1913_v14 = vpop.f32.mrb[93].mxu0 }
 0xa76   :  { %v3407_v15 = vpop.f32.mrb[94].mxu0 }
 0xa77   :  { %v1935_v17 = vpack.c.bf16 %v3407_v15, %v3406_v13  ;;  %v1916_v18 = vpop.f32.mrb[95].mxu0  ;;  %3419 = vmatpush3.bf16.msra.mxu1 %v1933_v10 }
 0xa78   :  { %v1934_v19 = vpack.c.bf16 %v1916_v18, %v1913_v14 }
 0xa7a   :  { %3420 = vmatprep.subr.bf16.mxu1 %v1934_v19 }
 0xa7b   :  { %3421 = vmatpush3.bf16.msra.mxu1 %v1934_v19 }
 0xa7c   :  { %3422 = vmatprep.subr.bf16.mxu1 %v1935_v17 }
 0xa7f   :  { %3423 = vmatpush3.bf16.msra.mxu1 %v1935_v17 }
 0xa82   :  { %3425 = vmatmul.mubr.bf16.vlgmr.msra.gmra.mrb[80].mxu1 %v3935_v53 }
 0xa83   :  { %3428 = vmatprep.mubr.bf16.mxu1 %v3938_v16 }
 0xa8a   :  { %3429 = vmatmul.mubr.bf16.gmra.mrb[84].mxu1 %v3941_v37 }
 0xa8b   :  { %3432 = vmatprep.mubr.bf16.mxu1 %v3944_v38 }
 0xa92   :  { %3433 = vmatmul.mubr.bf16.gmra.mrb[88].mxu1 %v3947_v39 }
 0xa93   :  { %3436 = vmatprep.mubr.bf16.mxu1 %v3950_v40 }
 0xa9a   :  { %3437 = vmatmul.mubr.bf16.gmra.mrb[92].mxu1 %v3953_v41 }
 0xa9b   :  { %3488 = vmatprep.mubr.bf16.mxu1 %v3956_v42 }
 0xb55   :  { %v3426_v23 = vpop.f32.mrb[80].mxu1 }
 0xb56   :  { %v1984_v24 = vadd.f32 %v3426_v23, %v2781_v22  ;;  %v1975_v25 = vpop.f32.mrb[81].mxu1 }
 0xb57   :  { %v1976_v27 = vadd.f32 %v2781_v22, %v1975_v25  ;;  %v3427_v28 = vpop.f32.mrb[82].mxu1  ;;  %v3650_v25 = vld [vmem:[#allocation8 + $0x1c8] sm:$0xff]  }
 0xb58   :  { %v1987_v29 = vadd.f32 %v3427_v28, %v2781_v22  ;;  %v1978_v30 = vpop.f32.mrb[83].mxu1  ;;  %v2040_v26 = vmax.f32 %v1984_v24, 0.0  ;;  %v3649_v24 = vld [vmem:[#allocation8 + $0x1c0] sm:$0xff]   ;;  %v3652_v28 = vld [vmem:[#allocation8 + $0x1d8] sm:$0xff]  }
 0xb59   :  { %v1979_v31 = vadd.f32 %v2781_v22, %v1978_v30  ;;  %v2038_v33 = vmax.f32 %v1976_v27, 0.0  ;;  %3504 = vmatprep.subr.bf16.mxu0 %v3649_v24  ;;  %v3651_v27 = vld [vmem:[#allocation8 + $0x1d0] sm:$0xff]  }
 0xb5a   :  { %v2041_v32 = vmax.f32 %v1987_v29, 0.0  ;;  %v3654_v29 = vld [vmem:[#allocation8 + $0x1e8] sm:$0xff]  }
 0xb5b   :  { %v2039_v34 = vmax.f32 %v1979_v31, 0.0 }
 0xb5c   :  { %v2055_v35 = vpack.c.bf16 %v2041_v32, %v2040_v26 }
 0xb5d   :  { %v2054_v47 = vpack.c.bf16 %v2039_v34, %v2038_v33  ;;  %v3430_v48 = vpop.f32.mrb[84].mxu1 }
 0xb5e   :  { %v2000_v49 = vadd.f32 %v3430_v48, %v2781_v22  ;;  %v1991_v50 = vpop.f32.mrb[85].mxu1 }
 0xb5f   :  { %v1992_v51 = vadd.f32 %v2781_v22, %v1991_v50  ;;  %v3431_v36 = vpop.f32.mrb[86].mxu1  ;;  %3456 = vmatprep.mubr.bf16.mxu0 %v2054_v47 }
 0xb60   :  { %v2003_v52 = vadd.f32 %v3431_v36, %v2781_v22  ;;  %v1994_v43 = vpop.f32.mrb[87].mxu1  ;;  %3457 = vmatmul.mubr.bf16.vlgmr.msra.gmra.mrb[96].mxu0 %v2055_v35  ;;  %v2044_v46 = vmax.f32 %v2000_v49, 0.0 }
 0xb61   :  { %v1995_v44 = vadd.f32 %v2781_v22, %v1994_v43  ;;  %v2042_v55 = vmax.f32 %v1992_v51, 0.0  ;;  %3505 = vmatpush3.bf16.msra.mxu0 %v3649_v24 }
 0xb62   :  { %v2045_v54 = vmax.f32 %v2003_v52, 0.0  ;;  %3506 = vmatprep.subr.bf16.mxu0 %v3650_v25 }
 0xb63   :  { %v2043_v57 = vmax.f32 %v1995_v44, 0.0 }
 0xb64   :  { %v2057_v58 = vpack.c.bf16 %v2045_v54, %v2044_v46 }
 0xb65   :  { %v2056_v45 = vpack.c.bf16 %v2043_v57, %v2042_v55  ;;  %v3434_v59 = vpop.f32.mrb[88].mxu1  ;;  %3507 = vmatpush3.bf16.msra.mxu0 %v3650_v25 }
 0xb66   :  { %v2016_v60 = vadd.f32 %v3434_v59, %v2781_v22  ;;  %v2007_v61 = vpop.f32.mrb[89].mxu1  ;;  %3508 = vmatprep.subr.bf16.mxu0 %v3651_v27 }
 0xb67   :  { %v2008_v56 = vadd.f32 %v2781_v22, %v2007_v61  ;;  %v3435_v62 = vpop.f32.mrb[90].mxu1  ;;  %3460 = vmatprep.mubr.bf16.mxu0 %v2056_v45  ;;  %v3655_v61 = vld [vmem:[#allocation8 + $0x1f0] sm:$0xff]  }
 0xb68   :  { %v2019_v63 = vadd.f32 %v3435_v62, %v2781_v22  ;;  %v2010_v0 = vpop.f32.mrb[91].mxu1  ;;  %3461 = vmatmul.mubr.bf16.gmra.mrb[100].mxu0 %v2057_v58  ;;  %v2048_v3 = vmax.f32 %v2016_v60, 0.0  ;;  %v2790_v62 = vld [vmem:[%s4027_s3 + $0x6] ss:$0 sm:$0xff] }
 0xb69   :  { %v2011_v1 = vadd.f32 %v2781_v22, %v2010_v0  ;;  %v2046_v5 = vmax.f32 %v2008_v56, 0.0  ;;  %3509 = vmatpush3.bf16.msra.mxu0 %v3651_v27  ;;  %v3656_v56 = vld [vmem:[#allocation8 + $0x1f8] sm:$0xff]  }
 0xb6a   :  { %v2049_v4 = vmax.f32 %v2019_v63, 0.0  ;;  %3510 = vmatprep.subr.bf16.mxu0 %v3652_v28 }
 0xb6b   :  { %v2047_v6 = vmax.f32 %v2011_v1, 0.0 }
 0xb6c   :  { %v2059_v7 = vpack.c.bf16 %v2049_v4, %v2048_v3 }
 0xb6d   :  { %v2058_v2 = vpack.c.bf16 %v2047_v6, %v2046_v5  ;;  %v3438_v8 = vpop.f32.mrb[92].mxu1  ;;  %3511 = vmatpush3.bf16.msra.mxu0 %v3652_v28 }
 0xb6e   :  { %v2032_v9 = vadd.f32 %v3438_v8, %v2781_v22  ;;  %v2023_v10 = vpop.f32.mrb[93].mxu1 }
 0xb6f   :  { %v2024_v11 = vadd.f32 %v2781_v22, %v2023_v10  ;;  %v3439_v12 = vpop.f32.mrb[94].mxu1  ;;  %3464 = vmatprep.mubr.bf16.mxu0 %v2058_v2 }
 0xb70   :  { %v2035_v13 = vadd.f32 %v3439_v12, %v2781_v22  ;;  %v2026_v14 = vpop.f32.mrb[95].mxu1  ;;  %3465 = vmatmul.mubr.bf16.gmra.mrb[104].mxu0 %v2059_v7  ;;  %v2052_v17 = vmax.f32 %v2032_v9, 0.0 }
 0xb71   :  { %v2027_v15 = vadd.f32 %v2781_v22, %v2026_v14  ;;  %v2050_v19 = vmax.f32 %v2024_v11, 0.0  ;;  %v3653_v22 = vld [vmem:[#allocation8 + $0x1e0] sm:$0xff]  }
 0xb72   :  { %v2053_v18 = vmax.f32 %v2035_v13, 0.0  ;;  %3512 = vmatprep.subr.bf16.mxu0 %v3653_v22 }
 0xb73   :  { %v2051_v20 = vmax.f32 %v2027_v15, 0.0  ;;  %3513 = vmatpush3.bf16.msra.mxu0 %v3653_v22 }
 0xb74   :  { %v2061_v21 = vpack.c.bf16 %v2053_v18, %v2052_v17  ;;  %3514 = vmatprep.subr.bf16.mxu0 %v3654_v29 }
 0xb75   :  { %v2060_v23 = vpack.c.bf16 %v2051_v20, %v2050_v19 }
 0xb77   :  { %3468 = vmatprep.mubr.bf16.mxu0 %v2060_v23  ;;  %3515 = vmatpush3.bf16.msra.mxu0 %v3654_v29 }
 0xb78   :  { %3469 = vmatmul.mubr.bf16.gmra.mrb[108].mxu0 %v2061_v21  ;;  %3516 = vmatprep.subr.bf16.mxu0 %v3655_v61 }
 0xb7b   :  { %3517 = vmatpush3.bf16.msra.mxu0 %v3655_v61 }
 0xb7c   :  { %3518 = vmatprep.subr.bf16.mxu0 %v3656_v56 }
 0xb7f   :  { %3519 = vmatpush3.bf16.msra.mxu0 %v3656_v56 }
 0xc33   :  { %v3458_v30 = vpop.f32.mrb[96].mxu0 }
 0xc34   :  { %v2177_v31 = vpop.f32.mrb[97].mxu0 }
 0xc35   :  { %v3459_v26 = vpop.f32.mrb[98].mxu0 }
 0xc36   :  { %v2241_v32 = vpack.c.bf16 %v3459_v26, %v3458_v30  ;;  %v2180_v33 = vpop.f32.mrb[99].mxu0 }
 0xc37   :  { %v2240_v34 = vpack.c.bf16 %v2180_v33, %v2177_v31 }
 0xc39   :  { %3472 = vmatprep.subr.bf16.mxu1 %v2240_v34 }
 0xc3a   :  { %3473 = vmatpush3.bf16.msra.mxu1 %v2240_v34 }
 0xc3b   :  { %v3462_v35 = vpop.f32.mrb[100].mxu0  ;;  %3474 = vmatprep.subr.bf16.mxu1 %v2241_v32 }
 0xc3c   :  { %v2193_v47 = vpop.f32.mrb[101].mxu0 }
 0xc3d   :  { %v3463_v48 = vpop.f32.mrb[102].mxu0 }
 0xc3e   :  { %v2243_v49 = vpack.c.bf16 %v3463_v48, %v3462_v35  ;;  %v2196_v50 = vpop.f32.mrb[103].mxu0  ;;  %3475 = vmatpush3.bf16.msra.mxu1 %v2241_v32 }
 0xc3f   :  { %v2242_v51 = vpack.c.bf16 %v2196_v50, %v2193_v47 }
 0xc41   :  { %3476 = vmatprep.subr.bf16.mxu1 %v2242_v51 }
 0xc42   :  { %3477 = vmatpush3.bf16.msra.mxu1 %v2242_v51 }
 0xc43   :  { %v3466_v36 = vpop.f32.mrb[104].mxu0  ;;  %3478 = vmatprep.subr.bf16.mxu1 %v2243_v49 }
 0xc44   :  { %v2209_v52 = vpop.f32.mrb[105].mxu0 }
 0xc45   :  { %v3467_v43 = vpop.f32.mrb[106].mxu0 }
 0xc46   :  { %v2245_v44 = vpack.c.bf16 %v3467_v43, %v3466_v36  ;;  %v2212_v46 = vpop.f32.mrb[107].mxu0  ;;  %3479 = vmatpush3.bf16.msra.mxu1 %v2243_v49 }
 0xc47   :  { %v2244_v54 = vpack.c.bf16 %v2212_v46, %v2209_v52 }
 0xc49   :  { %3480 = vmatprep.subr.bf16.mxu1 %v2244_v54 }
 0xc4a   :  { %3481 = vmatpush3.bf16.msra.mxu1 %v2244_v54 }
 0xc4b   :  { %v3470_v55 = vpop.f32.mrb[108].mxu0  ;;  %3482 = vmatprep.subr.bf16.mxu1 %v2245_v44 }
 0xc4c   :  { %v2225_v57 = vpop.f32.mrb[109].mxu0 }
 0xc4d   :  { %v3471_v58 = vpop.f32.mrb[110].mxu0 }
 0xc4e   :  { %v2247_v45 = vpack.c.bf16 %v3471_v58, %v3470_v55  ;;  %v2228_v59 = vpop.f32.mrb[111].mxu0  ;;  %3483 = vmatpush3.bf16.msra.mxu1 %v2245_v44 }
 0xc4f   :  { %v2246_v60 = vpack.c.bf16 %v2228_v59, %v2225_v57 }
 0xc51   :  { %3484 = vmatprep.subr.bf16.mxu1 %v2246_v60 }
 0xc52   :  { %3485 = vmatpush3.bf16.msra.mxu1 %v2246_v60 }
 0xc53   :  { %3486 = vmatprep.subr.bf16.mxu1 %v2247_v45 }
 0xc56   :  { %3487 = vmatpush3.bf16.msra.mxu1 %v2247_v45 }
 0xc59   :  { %3489 = vmatmul.mubr.bf16.vlgmr.msra.gmra.mrb[96].mxu1 %v3935_v53 }
 0xc5a   :  { %3492 = vmatprep.mubr.bf16.mxu1 %v3938_v16 }
 0xc61   :  { %3493 = vmatmul.mubr.bf16.gmra.mrb[100].mxu1 %v3941_v37 }
 0xc62   :  { %3496 = vmatprep.mubr.bf16.mxu1 %v3944_v38 }
 0xc69   :  { %3497 = vmatmul.mubr.bf16.gmra.mrb[104].mxu1 %v3947_v39 }
 0xc6a   :  { %3500 = vmatprep.mubr.bf16.mxu1 %v3950_v40 }
 0xc71   :  { %3501 = vmatmul.mubr.bf16.gmra.mrb[108].mxu1 %v3953_v41 }
 0xc72   :  { %3552 = vmatprep.mubr.bf16.mxu1 %v3956_v42 }
 0xd2c   :  { %v3490_v63 = vpop.f32.mrb[96].mxu1 }
 0xd2d   :  { %v2296_v0 = vadd.f32 %v3490_v63, %v2790_v62  ;;  %v2287_v1 = vpop.f32.mrb[97].mxu1 }
 0xd2e   :  { %v2288_v3 = vadd.f32 %v2790_v62, %v2287_v1  ;;  %v3491_v4 = vpop.f32.mrb[98].mxu1 }
 0xd2f   :  { %v2299_v5 = vadd.f32 %v3491_v4, %v2790_v62  ;;  %v2290_v6 = vpop.f32.mrb[99].mxu1  ;;  %v2352_v2 = vmax.f32 %v2296_v0, 0.0 }
 0xd30   :  { %v2291_v7 = vadd.f32 %v2790_v62, %v2290_v6  ;;  %v2350_v8 = vmax.f32 %v2288_v3, 0.0 }
 0xd31   :  { %v2353_v42 = vmax.f32 %v2299_v5, 0.0 }
 0xd32   :  { %v2351_v9 = vmax.f32 %v2291_v7, 0.0 }
 0xd33   :  { %v2367_v10 = vpack.c.bf16 %v2353_v42, %v2352_v2 }
 0xd34   :  { %v2366_v11 = vpack.c.bf16 %v2351_v9, %v2350_v8  ;;  %v3494_v12 = vpop.f32.mrb[100].mxu1 }
 0xd35   :  { %v2312_v13 = vadd.f32 %v3494_v12, %v2790_v62  ;;  %v2303_v14 = vpop.f32.mrb[101].mxu1 }
 0xd36   :  { %v2304_v15 = vadd.f32 %v2790_v62, %v2303_v14  ;;  %v3495_v17 = vpop.f32.mrb[102].mxu1  ;;  %3520 = vmatprep.mubr.bf16.mxu0 %v2366_v11 }
 0xd37   :  { %v2315_v18 = vadd.f32 %v3495_v17, %v2790_v62  ;;  %v2306_v19 = vpop.f32.mrb[103].mxu1  ;;  %3521 = vmatmul.mubr.bf16.vlgmr.msra.gmra.mrb[112].mxu0 %v2367_v10  ;;  %v2356_v21 = vmax.f32 %v2312_v13, 0.0 }
 0xd38   :  { %v2307_v20 = vadd.f32 %v2790_v62, %v2306_v19  ;;  %v2354_v24 = vmax.f32 %v2304_v15, 0.0 }
 0xd39   :  { %v2357_v23 = vmax.f32 %v2315_v18, 0.0 }
 0xd3a   :  { %v2355_v25 = vmax.f32 %v2307_v20, 0.0 }
 0xd3b   :  { %v2369_v27 = vpack.c.bf16 %v2357_v23, %v2356_v21 }
 0xd3c   :  { %v2368_v28 = vpack.c.bf16 %v2355_v25, %v2354_v24  ;;  %v3498_v22 = vpop.f32.mrb[104].mxu1 }
 0xd3d   :  { %v2328_v29 = vadd.f32 %v3498_v22, %v2790_v62  ;;  %v2319_v30 = vpop.f32.mrb[105].mxu1 }
 0xd3e   :  { %v2320_v31 = vadd.f32 %v2790_v62, %v2319_v30  ;;  %v3499_v26 = vpop.f32.mrb[106].mxu1  ;;  %3524 = vmatprep.mubr.bf16.mxu0 %v2368_v28 }
 0xd3f   :  { %v2331_v32 = vadd.f32 %v3499_v26, %v2790_v62  ;;  %v2322_v33 = vpop.f32.mrb[107].mxu1  ;;  %3525 = vmatmul.mubr.bf16.gmra.mrb[116].mxu0 %v2369_v27  ;;  %v2360_v35 = vmax.f32 %v2328_v29, 0.0 }
 0xd40   :  { %v2323_v34 = vadd.f32 %v2790_v62, %v2322_v33  ;;  %v2358_v48 = vmax.f32 %v2320_v31, 0.0 }
 0xd41   :  { %v2361_v47 = vmax.f32 %v2331_v32, 0.0 }
 0xd42   :  { %v2359_v49 = vmax.f32 %v2323_v34, 0.0 }
 0xd43   :  { %v2371_v50 = vpack.c.bf16 %v2361_v47, %v2360_v35 }
 0xd44   :  { %v2370_v51 = vpack.c.bf16 %v2359_v49, %v2358_v48  ;;  %v3502_v36 = vpop.f32.mrb[108].mxu1 }
 0xd45   :  { %v2344_v52 = vadd.f32 %v3502_v36, %v2790_v62  ;;  %v2335_v43 = vpop.f32.mrb[109].mxu1 }
 0xd46   :  { %v2336_v44 = vadd.f32 %v2790_v62, %v2335_v43  ;;  %v3503_v46 = vpop.f32.mrb[110].mxu1  ;;  %3528 = vmatprep.mubr.bf16.mxu0 %v2370_v51 }
 0xd47   :  { %v2347_v54 = vadd.f32 %v3503_v46, %v2790_v62  ;;  %v2338_v55 = vpop.f32.mrb[111].mxu1  ;;  %3529 = vmatmul.mubr.bf16.gmra.mrb[120].mxu0 %v2371_v50  ;;  %v2364_v58 = vmax.f32 %v2344_v52, 0.0 }
 0xd48   :  { %v2339_v57 = vadd.f32 %v2790_v62, %v2338_v55  ;;  %v2362_v59 = vmax.f32 %v2336_v44, 0.0 }
 0xd49   :  { %v2365_v45 = vmax.f32 %v2347_v54, 0.0 }
 0xd4a   :  { %v2363_v60 = vmax.f32 %v2339_v57, 0.0 }
 0xd4b   :  { %v2373_v61 = vpack.c.bf16 %v2365_v45, %v2364_v58 }
 0xd4c   :  { %v2372_v56 = vpack.c.bf16 %v2363_v60, %v2362_v59 }
 0xd4e   :  { %3532 = vmatprep.mubr.bf16.mxu0 %v2372_v56 }
 0xd4f   :  { %3533 = vmatmul.mubr.bf16.gmra.mrb[124].mxu0 %v2373_v61 }
 0xe0a   :  { %v3522_v63 = vpop.f32.mrb[112].mxu0 }
 0xe0b   :  { %v2489_v0 = vpop.f32.mrb[113].mxu0 }
 0xe0c   :  { %v3523_v1 = vpop.f32.mrb[114].mxu0 }
 0xe0d   :  { %v2553_v3 = vpack.c.bf16 %v3523_v1, %v3522_v63  ;;  %v2492_v4 = vpop.f32.mrb[115].mxu0 }
 0xe0e   :  { %v2552_v5 = vpack.c.bf16 %v2492_v4, %v2489_v0 }
 0xe10   :  { %3536 = vmatprep.subr.bf16.mxu1 %v2552_v5 }
 0xe11   :  { %3537 = vmatpush3.bf16.msra.mxu1 %v2552_v5 }
 0xe12   :  { %v3526_v6 = vpop.f32.mrb[116].mxu0  ;;  %3538 = vmatprep.subr.bf16.mxu1 %v2553_v3 }
 0xe13   :  { %v2505_v7 = vpop.f32.mrb[117].mxu0 }
 0xe14   :  { %v3527_v62 = vpop.f32.mrb[118].mxu0 }
 0xe15   :  { %v2555_v2 = vpack.c.bf16 %v3527_v62, %v3526_v6  ;;  %v2508_v42 = vpop.f32.mrb[119].mxu0  ;;  %3539 = vmatpush3.bf16.msra.mxu1 %v2553_v3 }
 0xe16   :  { %v2554_v8 = vpack.c.bf16 %v2508_v42, %v2505_v7 }
 0xe18   :  { %3540 = vmatprep.subr.bf16.mxu1 %v2554_v8 }
 0xe19   :  { %3541 = vmatpush3.bf16.msra.mxu1 %v2554_v8 }
 0xe1a   :  { %v3530_v9 = vpop.f32.mrb[120].mxu0  ;;  %3542 = vmatprep.subr.bf16.mxu1 %v2555_v2 }
 0xe1b   :  { %v2521_v10 = vpop.f32.mrb[121].mxu0 }
 0xe1c   :  { %v3531_v11 = vpop.f32.mrb[122].mxu0 }
 0xe1d   :  { %v2557_v12 = vpack.c.bf16 %v3531_v11, %v3530_v9  ;;  %v2524_v13 = vpop.f32.mrb[123].mxu0  ;;  %3543 = vmatpush3.bf16.msra.mxu1 %v2555_v2 }
 0xe1e   :  { %v2556_v14 = vpack.c.bf16 %v2524_v13, %v2521_v10 }
 0xe20   :  { %3544 = vmatprep.subr.bf16.mxu1 %v2556_v14 }
 0xe21   :  { %3545 = vmatpush3.bf16.msra.mxu1 %v2556_v14 }
 0xe22   :  { %v3534_v15 = vpop.f32.mrb[124].mxu0  ;;  %3546 = vmatprep.subr.bf16.mxu1 %v2557_v12 }
 0xe23   :  { %v2537_v17 = vpop.f32.mrb[125].mxu0 }
 0xe24   :  { %v3535_v18 = vpop.f32.mrb[126].mxu0 }
 0xe25   :  { %v2559_v19 = vpack.c.bf16 %v3535_v18, %v3534_v15  ;;  %v2540_v20 = vpop.f32.mrb[127].mxu0  ;;  %3547 = vmatpush3.bf16.msra.mxu1 %v2557_v12 }
 0xe26   :  { %v2558_v21 = vpack.c.bf16 %v2540_v20, %v2537_v17 }
 0xe28   :  { %3548 = vmatprep.subr.bf16.mxu1 %v2558_v21 }
 0xe29   :  { %3549 = vmatpush3.bf16.msra.mxu1 %v2558_v21 }
 0xe2a   :  { %3550 = vmatprep.subr.bf16.mxu1 %v2559_v19 }
 0xe2d   :  { %3551 = vmatpush3.bf16.msra.mxu1 %v2559_v19 }
 0xe30   :  { %3553 = vmatmul.mubr.bf16.vlgmr.msra.gmra.mrb[112].mxu1 %v3935_v53 }
 0xe31   :  { %3556 = vmatprep.mubr.bf16.mxu1 %v3938_v16 }
 0xe38   :  { %3557 = vmatmul.mubr.bf16.gmra.mrb[116].mxu1 %v3941_v37 }
 0xe39   :  { %3560 = vmatprep.mubr.bf16.mxu1 %v3944_v38 }
 0xe40   :  { %3561 = vmatmul.mubr.bf16.gmra.mrb[120].mxu1 %v3947_v39 }
 0xe41   :  { %3564 = vmatprep.mubr.bf16.mxu1 %v3950_v40 }
 0xe48   :  { %3565 = vmatmul.mubr.bf16.gmra.mrb[124].mxu1 %v3953_v41 }
 0xe49   :  { %3742 = shalt.err (!%p3739_p0)
}
 0xe4a   :  { %s3743_s22 = scalar_lea.hbm %s4028_s4, 2048 }
 0xe4b   :  { %p3744_p1 = scmp.ne.s32.totalorder %s4028_s4, %s3743_s22  ;;  %p3747_p2 = scmp.lt.u32.totalorder %s3743_s22, %s4028_s4 }
 0xe4d   :  { %p3749_p3 = pnand %p3747_p2, %p3744_p1 }
 0xe4f   :  { %3752 = shalt.err (!%p3749_p3)
}
 0xe50   :  { %s3789_s27 = smov 128   ;;  %s3790_s28 = smov 8   ;;  %v2799_v53 = vld [vmem:[%s4027_s3 + $0x7] ss:$0 sm:$0xff] }
 0xe51   :  { %2689 = dma.vmem_to_hbm [thread:$0]  %s2684_s17, 2048, %s4028_s4, [#allocation5], %s3789_s27, %s3789_s27, %s3790_s28  }
 0xe52   :  { %s3791_s3 = smov [#allocation10]  }
 0xe53   :  { %s2695_s4 = sshll.u32 %s3791_s3, 4  ;;  %s2696_s4 = int_to_ptr.vmem [resolvable:$true] %s2695_s4 }
 0xe54   :  { %s3753_s30 = scalar_lea.vmem %s2696_s4, 2048  ;;  %p3758_p5 = scmp.lt.s32.totalorder %s2696_s4, %s2696_s4 }
 0xe55   :  { %p3754_p4 = scmp.ne.s32.totalorder %s2696_s4, %s3753_s30  ;;  %p3759_p6 = scmp.lt.s32.totalorder %s3753_s30, %s3753_s30 }
 0xe57   :  { %p3760_p7 = por %p3759_p6, %p3758_p5 }
 0xe59   :  { %p3761_p8 = pnand %p3760_p7, %p3754_p4 }
 0xf03   :  { %v3554_v16 = vpop.f32.mrb[112].mxu1 }
 0xf04   :  { %v2608_v37 = vadd.f32 %v3554_v16, %v2799_v53  ;;  %v2599_v38 = vpop.f32.mrb[113].mxu1 }
 0xf05   :  { %v2600_v39 = vadd.f32 %v2799_v53, %v2599_v38  ;;  %v3555_v40 = vpop.f32.mrb[114].mxu1 }
 0xf06   :  { %2664 = vst [vmem:[#allocation10 + $0x10] sm:$0xff] %v2608_v37  ;;  %v2611_v41 = vadd.f32 %v3555_v40, %v2799_v53  ;;  %v2602_v23 = vpop.f32.mrb[115].mxu1 }
 0xf07   :  { %2662 = vst [vmem:[#allocation10] sm:$0xff] %v2600_v39  ;;  %v2603_v24 = vadd.f32 %v2799_v53, %v2602_v23 }
 0xf08   :  { %2665 = vst [vmem:[#allocation10 + $0x18] sm:$0xff] %v2611_v41 }
 0xf09   :  { %2663 = vst [vmem:[#allocation10 + $0x8] sm:$0xff] %v2603_v24 }
 0xf0b   :  { %v3558_v25 = vpop.f32.mrb[116].mxu1 }
 0xf0c   :  { %v2624_v27 = vadd.f32 %v3558_v25, %v2799_v53  ;;  %v2615_v28 = vpop.f32.mrb[117].mxu1 }
 0xf0d   :  { %v2616_v22 = vadd.f32 %v2799_v53, %v2615_v28  ;;  %v3559_v29 = vpop.f32.mrb[118].mxu1 }
 0xf0e   :  { %2668 = vst [vmem:[#allocation10 + $0x30] sm:$0xff] %v2624_v27  ;;  %v2627_v30 = vadd.f32 %v3559_v29, %v2799_v53  ;;  %v2618_v31 = vpop.f32.mrb[119].mxu1 }
 0xf0f   :  { %2666 = vst [vmem:[#allocation10 + $0x20] sm:$0xff] %v2616_v22  ;;  %v2619_v26 = vadd.f32 %v2799_v53, %v2618_v31 }
 0xf10   :  { %2669 = vst [vmem:[#allocation10 + $0x38] sm:$0xff] %v2627_v30 }
 0xf11   :  { %2667 = vst [vmem:[#allocation10 + $0x28] sm:$0xff] %v2619_v26 }
 0xf13   :  { %v3562_v32 = vpop.f32.mrb[120].mxu1 }
 0xf14   :  { %v2640_v33 = vadd.f32 %v3562_v32, %v2799_v53  ;;  %v2631_v34 = vpop.f32.mrb[121].mxu1 }
 0xf15   :  { %v2632_v35 = vadd.f32 %v2799_v53, %v2631_v34  ;;  %v3563_v47 = vpop.f32.mrb[122].mxu1 }
 0xf16   :  { %2672 = vst [vmem:[#allocation10 + $0x50] sm:$0xff] %v2640_v33  ;;  %v2643_v48 = vadd.f32 %v3563_v47, %v2799_v53  ;;  %v2634_v49 = vpop.f32.mrb[123].mxu1 }
 0xf17   :  { %2670 = vst [vmem:[#allocation10 + $0x40] sm:$0xff] %v2632_v35  ;;  %v2635_v50 = vadd.f32 %v2799_v53, %v2634_v49 }
 0xf18   :  { %2673 = vst [vmem:[#allocation10 + $0x58] sm:$0xff] %v2643_v48 }
 0xf19   :  { %2671 = vst [vmem:[#allocation10 + $0x48] sm:$0xff] %v2635_v50 }
 0xf1b   :  { %v3566_v51 = vpop.f32.mrb[124].mxu1 }
 0xf1c   :  { %v2656_v36 = vadd.f32 %v3566_v51, %v2799_v53  ;;  %v2647_v52 = vpop.f32.mrb[125].mxu1 }
 0xf1d   :  { %v2648_v43 = vadd.f32 %v2799_v53, %v2647_v52  ;;  %v3567_v44 = vpop.f32.mrb[126].mxu1 }
 0xf1e   :  { %2676 = vst [vmem:[#allocation10 + $0x70] sm:$0xff] %v2656_v36  ;;  %v2659_v46 = vadd.f32 %v3567_v44, %v2799_v53  ;;  %v2650_v54 = vpop.f32.mrb[127].mxu1 }
 0xf1f   :  { %2674 = vst [vmem:[#allocation10 + $0x60] sm:$0xff] %v2648_v43  ;;  %v2651_v55 = vadd.f32 %v2799_v53, %v2650_v54 }
 0xf20   :  { %2677 = vst [vmem:[#allocation10 + $0x78] sm:$0xff] %v2659_v46 }
 0xf21   :  { %2675 = vst [vmem:[#allocation10 + $0x68] sm:$0xff] %v2651_v55 }
 0xf22   :  { %3764 = shalt.err (!%p3761_p8)
}
 0xf23   :  { %s3765_s8 = scalar_lea.hbm %s4029_s5, 2048 }
 0xf24   :  { %p3766_p9 = scmp.ne.s32.totalorder %s4029_s5, %s3765_s8  ;;  %p3769_p10 = scmp.lt.u32.totalorder %s3765_s8, %s4029_s5 }
 0xf26   :  { %p3771_p11 = pnand %p3769_p10, %p3766_p9 }
 0xf28   :  { %3774 = shalt.err (!%p3771_p11)
}
 0xf29   :  { %2701 = dma.vmem_to_hbm [thread:$0]  %s2696_s4, 2048, %s4029_s5, [#allocation11], %s3789_s27, %s3789_s27, %s3790_s28  }
 0xf2a   :  { %3779 = dma.done.wait [#allocation5], 2048  }
 0xf2b   :  { %3780 = vsyncadd [#allocation5], 4294965248 }
 0xf2c   :  { %3781 = dma.done.wait [#allocation11], 2048  }
 0xf2d   :  { %3782 = vsyncadd [#allocation11], 4294965248 }
 0xf2e   :  { %2708 = vsyncpa [#allocation4], 1 }
 0xf2f   :  { %2709 = vsyncpa [#allocation7], 1 }
 0xf30   :  { %2710 = vsyncpa [#allocation5], 1 }
 0xf31   :  { %2711 = vsyncpa [#allocation11], 1 }

</bundles_post_ra>
